<compile_context>
chip_gen: v7x
topology: tpu7x:2x2x1
jax: 0.10.0
libtpu: 0.0.40
codegen_flags: <defaults>
</compile_context>

<pallas_src>
import jax
import jax.numpy as jnp
from jax.experimental import pallas as pl
from jax.experimental.pallas import tpu as pltpu

KH, KW = 3, 3


def _round_up(v, m):
    return (v + m - 1) // m * m


def _make_kernel(wp, mb, slab_rows):
    """wp: padded row stride, mb: output rows per block (HB*wp), slab_rows: mb + KH*wp."""

    def kernel(x_ref, w_ref, o_ref, xs_ref):
        # x_ref : (Hp*Wp, Cin)   full zero-padded image, flat, f32
        # w_ref : (KH*KW, Cin, Cout) bf16 taps
        # o_ref : (MB, Cout)     output block (rows [hb*HB, hb*HB+HB), width-padded)
        # xs_ref: (slab_rows, Cin) bf16 scratch: ReLU'd slab incl. bottom halo
        hb = pl.program_id(1)
        start = pl.multiple_of(hb * mb, 8)

        # ReLU + bf16 cast once per block (instead of once per tap).
        xs_ref[...] = jnp.maximum(
            x_ref[pl.ds(start, slab_rows), :], 0.0).astype(jnp.bfloat16)

        acc = jnp.zeros(o_ref.shape, jnp.float32)
        for dy in range(KH):            # static unroll: 9 large MXU matmuls
            for dx in range(KW):
                off = dy * wp + dx      # static offset into the flat slab
                acc = acc + jnp.dot(
                    xs_ref[pl.ds(off, mb), :],
                    w_ref[dy * KW + dx],
                    preferred_element_type=jnp.float32)
        o_ref[...] = acc.astype(o_ref.dtype)

    return kernel


def relu_conv2d(x_nchw, w_oihw):
    """y = Conv2d(3x3, stride 1, pad 1, no bias)(ReLU(x)).  x: NCHW, w: OIHW."""
    N, Cin, H, W = x_nchw.shape
    Cout = w_oihw.shape[0]

    # Padded geometry: left pad 1, right pad so Wp is a multiple of 8 (>=1),
    # top pad 1, bottom pad 2 (1 for the conv + 1 slack row so every flat tap
    # slice stays in bounds).
    Wp = _round_up(W + 2, 8)
    Hp = H + KH
    pad_r = Wp - W - 1
    pad_b = Hp - H - 1

    # Rows-per-block: split H over >=2 grid steps when possible (v7x megacore),
    # keeping M = HB*Wp comfortably >= 256.
    HB = H // 2 if (H % 2 == 0 and H >= 4) else H
    MB = HB * Wp
    slab_rows = MB + KH * Wp            # block rows + halo (rounded to the array end)

    # Wrapper glue: NCHW -> NHWC -> padded -> flat (row stride Wp).
    x_nhwc = jnp.transpose(x_nchw, (0, 2, 3, 1))
    x_pad = jnp.pad(x_nhwc, ((0, 0), (1, pad_b), (1, pad_r), (0, 0)))
    x_flat = x_pad.reshape(N, Hp * Wp, Cin)

    # OIHW -> (KH*KW, Cin, Cout), bf16 for the MXU (f32 accumulation in-kernel).
    w = jnp.transpose(w_oihw, (2, 3, 1, 0)).reshape(KH * KW, Cin, Cout)
    w = w.astype(jnp.bfloat16)

    kernel = _make_kernel(Wp, MB, slab_rows)

    out_flat = pl.pallas_call(
        kernel,
        out_shape=jax.ShapeDtypeStruct((N, H * Wp, Cout), x_nchw.dtype),
        grid_spec=pltpu.PrefetchScalarGridSpec(
            num_scalar_prefetch=0,
            grid=(N, H // HB),
            in_specs=[
                # Full padded image resident (halo for free), batch squeezed.
                pl.BlockSpec((None, Hp * Wp, Cin), lambda n, hb: (n, 0, 0)),
                # Weights: constant block.
                pl.BlockSpec((KH * KW, Cin, Cout), lambda n, hb: (0, 0, 0)),
            ],
            out_specs=pl.BlockSpec((None, MB, Cout), lambda n, hb: (n, hb, 0)),
            scratch_shapes=[pltpu.VMEM((slab_rows, Cin), jnp.bfloat16)],
        ),
        compiler_params=pltpu.CompilerParams(
            dimension_semantics=("parallel", "parallel")),
    )(x_flat, w)

    # Flat -> (N, H, Wp, Cout), drop the right-pad garbage columns, -> NCHW.
    out_nhwc = out_flat.reshape(N, H, Wp, Cout)[:, :, :W, :]
    return jnp.transpose(out_nhwc, (0, 3, 1, 2))


if __name__ == "__main__":
    key = jax.random.PRNGKey(0)
    kx, kw = jax.random.split(key)

    # Shapes implied by module M: x50 = [1, 128, 28, 28], Conv2d(128 -> 128, 3x3).
    N, C, H, W = 1, 128, 28, 28
    x = jax.random.normal(kx, (N, C, H, W), dtype=jnp.float32)
    w = jax.random.normal(kw, (C, C, KH, KW), dtype=jnp.float32) * 0.05

    out = jax.jit(relu_conv2d)(x, w)
    out = jax.block_until_ready(out)

    # Reference computed with the same bf16-rounded operands the kernel feeds the
    # MXU (f32 accumulation), so the comparison isolates indexing/accumulation.
    x_bf = jnp.maximum(x, 0.0).astype(jnp.bfloat16).astype(jnp.float32)
    w_bf = w.astype(jnp.bfloat16).astype(jnp.float32)
    ref = jax.lax.conv_general_dilated(
        x_bf, w_bf,
        window_strides=(1, 1), padding=((1, 1), (1, 1)),
        dimension_numbers=("NCHW", "OIHW", "NCHW"))

    assert out.shape == (N, C, H, W), out.shape
    max_err = float(jnp.max(jnp.abs(out - ref)))
    assert max_err < 1e-2, max_err
    print("KERNEL_OK")
</pallas_src>

<mosaic_0001>
module attributes {stable_mosaic.version = 11 : i64} {
  func.func @kernel(%arg0: i32, %arg1: i32, %arg2: memref<1x992x128xf32, #tpu.memory_space<vmem>>, %arg3: memref<9x128x128xbf16, #tpu.memory_space<vmem>>, %arg4: memref<1x448x128xf32, #tpu.memory_space<vmem>>, %arg5: memref<544x128xbf16, #tpu.memory_space<vmem>>) attributes {dimension_semantics = [#tpu.dimension_semantics<parallel>, #tpu.dimension_semantics<parallel>], iteration_bounds = array<i64: 1, 2>, scalar_prefetch = 0 : i64, scratch_operands = 1 : i64, tpu.core_type = #tpu.core_type<tc>, window_params = [{transform_indices = @transform_0, window_bounds = array<i64: 1, 992, 128>}, {pipeline_mode = #tpu.pipeline_mode<synchronous>, transform_indices = @transform_1, window_bounds = array<i64: 9, 128, 128>}, {transform_indices = @transform_2, window_bounds = array<i64: 1, 448, 128>}]} {
    %c448_i32 = arith.constant 448 : i32
    %0 = arith.muli %arg1, %c448_i32 : i32
    %1 = tpu.assume_multiple %0, 8 : i32
    %c0 = arith.constant 0 : index
    %2 = arith.index_cast %1 : i32 to index
    %c0_0 = arith.constant 0 : index
    %3 = vector.load %arg2[%c0, %2, %c0_0] : memref<1x992x128xf32, #tpu.memory_space<vmem>>, vector<1x544x128xf32>
    %4 = vector.shape_cast %3 : vector<1x544x128xf32> to vector<544x128xf32>
    %cst = arith.constant 0.000000e+00 : f32
    %5 = vector.broadcast %cst : f32 to vector<544x128xf32>
    %6 = arith.maximumf %4, %5 : vector<544x128xf32>
    %7 = arith.truncf %6 : vector<544x128xf32> to vector<544x128xbf16>
    %c0_1 = arith.constant 0 : index
    %c0_2 = arith.constant 0 : index
    %8 = vector.load %arg5[%c0_1, %c0_2] : memref<544x128xbf16, #tpu.memory_space<vmem>>, vector<544x128xbf16>
    tpu.vector_store %arg5[%c0_1, %c0_2], %7 {strides = array<i32>} : memref<544x128xbf16, #tpu.memory_space<vmem>>, vector<544x128xbf16>,
    %cst_3 = arith.constant 0.000000e+00 : f32
    %9 = vector.broadcast %cst_3 : f32 to vector<448x128xf32>
    %c0_4 = arith.constant 0 : index
    %c0_5 = arith.constant 0 : index
    %10 = vector.load %arg5[%c0_4, %c0_5] : memref<544x128xbf16, #tpu.memory_space<vmem>>, vector<448x128xbf16>
    %c0_6 = arith.constant 0 : index
    %c0_7 = arith.constant 0 : index
    %c0_8 = arith.constant 0 : index
    %11 = vector.load %arg3[%c0_6, %c0_7, %c0_8] : memref<9x128x128xbf16, #tpu.memory_space<vmem>>, vector<1x128x128xbf16>
    %12 = vector.shape_cast %11 : vector<1x128x128xbf16> to vector<128x128xbf16>
    %cst_9 = arith.constant dense<0.000000e+00> : vector<448x128xf32>
    %13 = tpu.matmul %10, %12, %cst_9 {dimension_numbers = #tpu.dot_dimension_numbers<[1], [0], [0], [1], [0, 0, 1, 1], [], []>} : vector<448x128xbf16>, vector<128x128xbf16>, vector<448x128xf32> -> vector<448x128xf32>
    %14 = arith.addf %9, %13 : vector<448x128xf32>
    %c1 = arith.constant 1 : index
    %c0_10 = arith.constant 0 : index
    %15 = vector.load %arg5[%c1, %c0_10] : memref<544x128xbf16, #tpu.memory_space<vmem>>, vector<448x128xbf16>
    %c1_11 = arith.constant 1 : index
    %c0_12 = arith.constant 0 : index
    %c0_13 = arith.constant 0 : index
    %16 = vector.load %arg3[%c1_11, %c0_12, %c0_13] : memref<9x128x128xbf16, #tpu.memory_space<vmem>>, vector<1x128x128xbf16>
    %17 = vector.shape_cast %16 : vector<1x128x128xbf16> to vector<128x128xbf16>
    %cst_14 = arith.constant dense<0.000000e+00> : vector<448x128xf32>
    %18 = tpu.matmul %15, %17, %cst_14 {dimension_numbers = #tpu.dot_dimension_numbers<[1], [0], [0], [1], [0, 0, 1, 1], [], []>} : vector<448x128xbf16>, vector<128x128xbf16>, vector<448x128xf32> -> vector<448x128xf32>
    %19 = arith.addf %14, %18 : vector<448x128xf32>
    %c2 = arith.constant 2 : index
    %c0_15 = arith.constant 0 : index
    %20 = vector.load %arg5[%c2, %c0_15] : memref<544x128xbf16, #tpu.memory_space<vmem>>, vector<448x128xbf16>
    %c2_16 = arith.constant 2 : index
    %c0_17 = arith.constant 0 : index
    %c0_18 = arith.constant 0 : index
    %21 = vector.load %arg3[%c2_16, %c0_17, %c0_18] : memref<9x128x128xbf16, #tpu.memory_space<vmem>>, vector<1x128x128xbf16>
    %22 = vector.shape_cast %21 : vector<1x128x128xbf16> to vector<128x128xbf16>
    %cst_19 = arith.constant dense<0.000000e+00> : vector<448x128xf32>
    %23 = tpu.matmul %20, %22, %cst_19 {dimension_numbers = #tpu.dot_dimension_numbers<[1], [0], [0], [1], [0, 0, 1, 1], [], []>} : vector<448x128xbf16>, vector<128x128xbf16>, vector<448x128xf32> -> vector<448x128xf32>
    %24 = arith.addf %19, %23 : vector<448x128xf32>
    %c32 = arith.constant 32 : index
    %c0_20 = arith.constant 0 : index
    %25 = vector.load %arg5[%c32, %c0_20] : memref<544x128xbf16, #tpu.memory_space<vmem>>, vector<448x128xbf16>
    %c3 = arith.constant 3 : index
    %c0_21 = arith.constant 0 : index
    %c0_22 = arith.constant 0 : index
    %26 = vector.load %arg3[%c3, %c0_21, %c0_22] : memref<9x128x128xbf16, #tpu.memory_space<vmem>>, vector<1x128x128xbf16>
    %27 = vector.shape_cast %26 : vector<1x128x128xbf16> to vector<128x128xbf16>
    %cst_23 = arith.constant dense<0.000000e+00> : vector<448x128xf32>
    %28 = tpu.matmul %25, %27, %cst_23 {dimension_numbers = #tpu.dot_dimension_numbers<[1], [0], [0], [1], [0, 0, 1, 1], [], []>} : vector<448x128xbf16>, vector<128x128xbf16>, vector<448x128xf32> -> vector<448x128xf32>
    %29 = arith.addf %24, %28 : vector<448x128xf32>
    %c33 = arith.constant 33 : index
    %c0_24 = arith.constant 0 : index
    %30 = vector.load %arg5[%c33, %c0_24] : memref<544x128xbf16, #tpu.memory_space<vmem>>, vector<448x128xbf16>
    %c4 = arith.constant 4 : index
    %c0_25 = arith.constant 0 : index
    %c0_26 = arith.constant 0 : index
    %31 = vector.load %arg3[%c4, %c0_25, %c0_26] : memref<9x128x128xbf16, #tpu.memory_space<vmem>>, vector<1x128x128xbf16>
    %32 = vector.shape_cast %31 : vector<1x128x128xbf16> to vector<128x128xbf16>
    %cst_27 = arith.constant dense<0.000000e+00> : vector<448x128xf32>
    %33 = tpu.matmul %30, %32, %cst_27 {dimension_numbers = #tpu.dot_dimension_numbers<[1], [0], [0], [1], [0, 0, 1, 1], [], []>} : vector<448x128xbf16>, vector<128x128xbf16>, vector<448x128xf32> -> vector<448x128xf32>
    %34 = arith.addf %29, %33 : vector<448x128xf32>
    %c34 = arith.constant 34 : index
    %c0_28 = arith.constant 0 : index
    %35 = vector.load %arg5[%c34, %c0_28] : memref<544x128xbf16, #tpu.memory_space<vmem>>, vector<448x128xbf16>
    %c5 = arith.constant 5 : index
    %c0_29 = arith.constant 0 : index
    %c0_30 = arith.constant 0 : index
    %36 = vector.load %arg3[%c5, %c0_29, %c0_30] : memref<9x128x128xbf16, #tpu.memory_space<vmem>>, vector<1x128x128xbf16>
    %37 = vector.shape_cast %36 : vector<1x128x128xbf16> to vector<128x128xbf16>
    %cst_31 = arith.constant dense<0.000000e+00> : vector<448x128xf32>
    %38 = tpu.matmul %35, %37, %cst_31 {dimension_numbers = #tpu.dot_dimension_numbers<[1], [0], [0], [1], [0, 0, 1, 1], [], []>} : vector<448x128xbf16>, vector<128x128xbf16>, vector<448x128xf32> -> vector<448x128xf32>
    %39 = arith.addf %34, %38 : vector<448x128xf32>
    %c64 = arith.constant 64 : index
    %c0_32 = arith.constant 0 : index
    %40 = vector.load %arg5[%c64, %c0_32] : memref<544x128xbf16, #tpu.memory_space<vmem>>, vector<448x128xbf16>
    %c6 = arith.constant 6 : index
    %c0_33 = arith.constant 0 : index
    %c0_34 = arith.constant 0 : index
    %41 = vector.load %arg3[%c6, %c0_33, %c0_34] : memref<9x128x128xbf16, #tpu.memory_space<vmem>>, vector<1x128x128xbf16>
    %42 = vector.shape_cast %41 : vector<1x128x128xbf16> to vector<128x128xbf16>
    %cst_35 = arith.constant dense<0.000000e+00> : vector<448x128xf32>
    %43 = tpu.matmul %40, %42, %cst_35 {dimension_numbers = #tpu.dot_dimension_numbers<[1], [0], [0], [1], [0, 0, 1, 1], [], []>} : vector<448x128xbf16>, vector<128x128xbf16>, vector<448x128xf32> -> vector<448x128xf32>
    %44 = arith.addf %39, %43 : vector<448x128xf32>
    %c65 = arith.constant 65 : index
    %c0_36 = arith.constant 0 : index
    %45 = vector.load %arg5[%c65, %c0_36] : memref<544x128xbf16, #tpu.memory_space<vmem>>, vector<448x128xbf16>
    %c7 = arith.constant 7 : index
    %c0_37 = arith.constant 0 : index
    %c0_38 = arith.constant 0 : index
    %46 = vector.load %arg3[%c7, %c0_37, %c0_38] : memref<9x128x128xbf16, #tpu.memory_space<vmem>>, vector<1x128x128xbf16>
    %47 = vector.shape_cast %46 : vector<1x128x128xbf16> to vector<128x128xbf16>
    %cst_39 = arith.constant dense<0.000000e+00> : vector<448x128xf32>
    %48 = tpu.matmul %45, %47, %cst_39 {dimension_numbers = #tpu.dot_dimension_numbers<[1], [0], [0], [1], [0, 0, 1, 1], [], []>} : vector<448x128xbf16>, vector<128x128xbf16>, vector<448x128xf32> -> vector<448x128xf32>
    %49 = arith.addf %44, %48 : vector<448x128xf32>
    %c66 = arith.constant 66 : index
    %c0_40 = arith.constant 0 : index
    %50 = vector.load %arg5[%c66, %c0_40] : memref<544x128xbf16, #tpu.memory_space<vmem>>, vector<448x128xbf16>
    %c8 = arith.constant 8 : index
    %c0_41 = arith.constant 0 : index
    %c0_42 = arith.constant 0 : index
    %51 = vector.load %arg3[%c8, %c0_41, %c0_42] : memref<9x128x128xbf16, #tpu.memory_space<vmem>>, vector<1x128x128xbf16>
    %52 = vector.shape_cast %51 : vector<1x128x128xbf16> to vector<128x128xbf16>
    %cst_43 = arith.constant dense<0.000000e+00> : vector<448x128xf32>
    %53 = tpu.matmul %50, %52, %cst_43 {dimension_numbers = #tpu.dot_dimension_numbers<[1], [0], [0], [1], [0, 0, 1, 1], [], []>} : vector<448x128xbf16>, vector<128x128xbf16>, vector<448x128xf32> -> vector<448x128xf32>
    %54 = arith.addf %49, %53 : vector<448x128xf32>
    %c0_44 = arith.constant 0 : index
    %c0_45 = arith.constant 0 : index
    %c0_46 = arith.constant 0 : index
    %55 = vector.load %arg4[%c0_44, %c0_45, %c0_46] : memref<1x448x128xf32, #tpu.memory_space<vmem>>, vector<1x448x128xf32>
    %56 = vector.shape_cast %55 : vector<1x448x128xf32> to vector<448x128xf32>
    %57 = vector.shape_cast %54 : vector<448x128xf32> to vector<1x448x128xf32>
    tpu.vector_store %arg4[%c0_44, %c0_45, %c0_46], %57 {strides = array<i32>} : memref<1x448x128xf32, #tpu.memory_space<vmem>>, vector<1x448x128xf32>,
    return
  }
  func.func @transform_0(%arg0: i32, %arg1: i32) -> (i32, i32, i32) {
    %c0_i32 = arith.constant 0 : i32
    %c0_i32_0 = arith.constant 0 : i32
    %c0_i32_1 = arith.constant 0 : i32
    return %arg0, %c0_i32, %c0_i32_0 : i32, i32, i32
  }
  func.func @transform_1(%arg0: i32, %arg1: i32) -> (i32, i32, i32) {
    %c0_i32 = arith.constant 0 : i32
    %c0_i32_0 = arith.constant 0 : i32
    %c0_i32_1 = arith.constant 0 : i32
    %c0_i32_2 = arith.constant 0 : i32
    return %c0_i32, %c0_i32_0, %c0_i32_1 : i32, i32, i32
  }
  func.func @transform_2(%arg0: i32, %arg1: i32) -> (i32, i32, i32) {
    %c0_i32 = arith.constant 0 : i32
    %c0_i32_0 = arith.constant 0 : i32
    return %arg0, %arg1, %c0_i32 : i32, i32, i32
  }
}

</mosaic_0001>

<bundles_post_ra>
// kernel: relu_conv2d.1
= control target key start
LH: loop header
LB: loop body
LE: loop exit
PB: predicated region body
PF: predicated region fallthrough
CT: control target
= control target key end

     0   :  { %s6881_s9 = smov 0   ;;  %s6883_s10 = smov 0   ;;  %s7987_s0 = inlined_call_operand.vmem [shape: f32[1,992,128], index: 0, kind: input, shape index: {}]   ;;  %s7988_s1 = inlined_call_operand.vmem [shape: bf16[9,128,128], index: 1, kind: input, shape index: {}]   ;;  %s7989_s2 = inlined_call_operand.vmem [shape: f32[1,896,128], index: 2, kind: output, shape index: {}]  }
   0x1   :  { %s6885_s11 = smov 0  }
   0x2 LB: > { %s21_s12 = sadd.s32 1, %s6860_s10  ;;  %p5067_p0 = scmp.ge.s32.totalorder %s6864_s11, 1  ;;  %s6864_s11 = sphi %s6885_s11, %s12_s11   ;;  %s6860_s10 = sphi %s6883_s10, %s7994_s10   ;;  %s6856_s9 = sphi %s6881_s9, %s7993_s9  }
   0x3   : > { %p22_p1 = scmp.ge.s32.totalorder %s21_s12, 2  ;;  %p126_p2 = scmp.lt.s32.totalorder %s6864_s11, 3 }
   0x5   : > { %s7996_s12 = smov (%p22_p1, %s21_s12), 0  ;;  %p127_p3 = pnand %p5067_p0, %p126_p2 }
   0x7   : > { %130 = sbr.rel (%p127_p3) target bundleno = 762 (0x2fa), region = 28 }
   0xe   : > { %v6731_v0 = vld [vmem:[%s7988_s1 + $0x40] sm:$0xff]   ;;  %v6733_v2 = vld [vmem:[%s7988_s1 + $0x48] sm:$0xff]   ;;  %v6735_v4 = vld [vmem:[%s7988_s1 + $0x50] sm:$0xff]   ;;  %s168_s29 = smul.u32 448, %s6856_s9  ;;  %vm436_vm0 = vsmask.f32 7424 }
   0xf   : > { %v6732_v1 = vld [vmem:[%s7988_s1 + $0x100] sm:$0xff]   ;;  %5595 = vmatprep.subr.bf16.mxu1 %v6731_v0  ;;  %v6734_v3 = vld [vmem:[%s7988_s1 + $0x108] sm:$0xff]   ;;  %v6736_v5 = vld [vmem:[%s7988_s1 + $0x110] sm:$0xff]   ;;  %vm1350_vm1 = vcmask 1046528   ;;  %s157_s13 = smul.u32 56, %s6856_s9 }
  0x10   : > { %5883 = vmatprep.subr.bf16.mxu0 %v6732_v1  ;;  %5596 = vmatpush3.bf16.msra.mxu1 %v6731_v0  ;;  %v6737_v6 = vld [vmem:[%s7988_s1 + $0x58] sm:$0xff]   ;;  %v6739_v8 = vld [vmem:[%s7988_s1 + $0x60] sm:$0xff]   ;;  %s6935_s8 = scalar_lea.vmem %s7987_s0, %s168_s29  ;;  %v6741_v10 = vld [vmem:[%s7988_s1 + $0x68] sm:$0xff]  }
  0x11   : > { %5884 = vmatpush3.bf16.msra.mxu0 %v6732_v1  ;;  %5597 = vmatprep.subr.bf16.mxu1 %v6733_v2  ;;  %v6738_v7 = vld [vmem:[%s7988_s1 + $0x118] sm:$0xff]   ;;  %v6740_v9 = vld [vmem:[%s7988_s1 + $0x120] sm:$0xff]   ;;  %v6742_v11 = vld [vmem:[%s7988_s1 + $0x128] sm:$0xff]   ;;  %p160_p4 = scmp.lt.s32.totalorder %s157_s13, 111 }
  0x12   : > { %5885 = vmatprep.subr.bf16.mxu0 %v6734_v3  ;;  %v170_v12 = vld [vmem:[%s6935_s8] sm:$0xff]  ;;  %v171_v13 = vld [vmem:[%s6935_s8 + $0x8] sm:$0xff]  ;;  %v172_v14 = vld [vmem:[%s6935_s8 + $0x10] sm:$0xff] }
  0x13   : > { %v173_v15 = vld [vmem:[%s6935_s8 + $0x18] sm:$0xff]  ;;  %v238_v16 = vmax.f32 %v170_v12, 0.0  ;;  %v239_v17 = vmax.f32 %v171_v13, 0.0  ;;  %v240_v18 = vmax.f32 %v172_v14, 0.0  ;;  %v6743_v19 = vld [vmem:[%s7988_s1 + $0x70] sm:$0xff]   ;;  %v174_v21 = vld [vmem:[%s6935_s8 + $0x20] sm:$0xff] }
  0x14   : > { %5598 = vmatpush3.bf16.msra.mxu1 %v6733_v2  ;;  %v241_v20 = vmax.f32 %v173_v15, 0.0  ;;  %v175_v22 = vld [vmem:[%s6935_s8 + $0x28] sm:$0xff]  ;;  %v176_v23 = vld [vmem:[%s6935_s8 + $0x30] sm:$0xff]  ;;  %v177_v26 = vld [vmem:[%s6935_s8 + $0x38] sm:$0xff]  ;;  %v242_v27 = vmax.f32 %v174_v21, 0.0  ;;  %s7998_s13 = smov (!%p160_p4, %s157_s13), 111 }
  0x15   : > { %5886 = vmatpush3.bf16.msra.mxu0 %v6734_v3  ;;  %5599 = vmatprep.subr.bf16.mxu1 %v6735_v4  ;;  %v6744_v24 = vld [vmem:[%s7988_s1 + $0x130] sm:$0xff]   ;;  %v306_v25 = vpack.c.bf16 %v239_v17, %v238_v16  ;;  %v243_v28 = vmax.f32 %v175_v22, 0.0  ;;  %v244_v29 = vmax.f32 %v176_v23, 0.0  ;;  %v245_v31 = vmax.f32 %v177_v26, 0.0  ;;  %v178_v32 = vld [vmem:[%s6935_s8 + $0x40] sm:$0xff]  ;;  %v179_v36 = vld [vmem:[%s6935_s8 + $0x48] sm:$0xff] }
  0x16   : > { %5887 = vmatprep.subr.bf16.mxu0 %v6736_v5  ;;  %v307_v30 = vpack.c.bf16 %v241_v20, %v240_v18  ;;  %v246_v37 = vmax.f32 %v178_v32, 0.0  ;;  %v247_v41 = vmax.f32 %v179_v36, 0.0  ;;  %v6745_v42 = vld [vmem:[%s7988_s1 + $0x78] sm:$0xff]   ;;  %v180_v46 = vld [vmem:[%s6935_s8 + $0x50] sm:$0xff]  ;;  %v182_v57 = vld [vmem:[%s6935_s8 + $0x60] sm:$0xff]  ;;  %s5068_s14 = sshll.u32 %s7998_s13, 3 }
  0x17   : > { %340 = vst [vmem:[#allocation2] sm:$0xff] %v306_v25  ;;  %v438_v33 = vshrl.u32 %v306_v25, 16  ;;  %v440_v34 = vshll.u32 %v306_v25, 16  ;;  %v308_v35 = vpack.c.bf16 %v243_v28, %v242_v27  ;;  %v6959_v39 = vpack.c.bf16 %v245_v31, %v244_v29  ;;  %v181_v47 = vld [vmem:[%s6935_s8 + $0x58] sm:$0xff]  ;;  %v6747_v60 = vld [vmem:[%s7988_s1] sm:$0xff]   ;;  %v183_v63 = vld [vmem:[%s6935_s8 + $0x68] sm:$0xff]  ;;  %s7907_s17 = scalar_lea.vmem %s7989_s2, %s5068_s14 }
  0x18   : > { %5600 = vmatpush3.bf16.msra.mxu1 %v6735_v4  ;;  %341 = vst [vmem:[#allocation2 + $0x8] sm:$0xff] %v307_v30  ;;  %v445_v38 = vshll.u32 %v307_v30, 16  ;;  %v449_v40 = vshrl.u32 %v307_v30, 16  ;;  %v6746_v48 = vld [vmem:[%s7988_s1 + $0x138] sm:$0xff]   ;;  %v6971_v51 = vpack.c.bf16 %v247_v41, %v246_v37  ;;  %v248_v55 = vmax.f32 %v180_v46, 0.0  ;;  %v186_v13 = vld [vmem:[%s6935_s8 + $0x80] sm:$0xff] }
  0x19   : > { %5888 = vmatpush3.bf16.msra.mxu0 %v6736_v5  ;;  %5601 = vmatprep.subr.bf16.mxu1 %v6737_v6  ;;  %v442_v43 = vrot.slane %v440_v34, 1  ;;  %342 = vst [vmem:[#allocation2 + $0x10] sm:$0xff] %v308_v35  ;;  %v2250_v44 = vshrl.u32 %v308_v35, 16  ;;  %v2252_v45 = vshll.u32 %v308_v35, 16  ;;  %343 = vst [vmem:[#allocation2 + $0x18] sm:$0xff] %v6959_v39  ;;  %v2257_v50 = vshll.u32 %v6959_v39, 16 }
  0x1a   : > { %5889 = vmatprep.subr.bf16.mxu0 %v6738_v7  ;;  %v447_v49 = vrot.slane %v445_v38, 1  ;;  %v2261_v52 = vshrl.u32 %v6959_v39, 16  ;;  %v249_v56 = vmax.f32 %v181_v47, 0.0  ;;  %344 = vst [vmem:[#allocation2 + $0x20] sm:$0xff] %v6971_v51  ;;  %v2265_v61 = vshll.u32 %v6971_v51, 16  ;;  %v6748_v5 = vld [vmem:[%s7988_s1 + $0x140] sm:$0xff]  }
  0x1b   : > { %v443_v53 = vor.u32 %v442_v43, %v438_v33  ;;  %v2254_v54 = vrot.slane %v2252_v45, 1  ;;  %v2259_v58 = vrot.slane %v2257_v50, 1  ;;  %v2269_v62 = vshrl.u32 %v6971_v51, 16  ;;  %v187_v14 = vld [vmem:[%s6935_s8 + $0x88] sm:$0xff]  ;;  %v190_v25 = vld [vmem:[%s6935_s8 + $0xa0] sm:$0xff]  ;;  %v192_v41 = vld [vmem:[%s6935_s8 + $0xb0] sm:$0xff] }
  0x1c   : > { %5602 = vmatpush3.bf16.msra.mxu1 %v6737_v6  ;;  %v451_v59 = vor.u32 %v449_v40, %v447_v49  ;;  %v6983_v2 = vpack.c.bf16 %v249_v56, %v248_v55  ;;  %v2267_v4 = vrot.slane %v2265_v61, 1  ;;  %v250_v6 = vmax.f32 %v182_v57, 0.0  ;;  %v191_v26 = vld [vmem:[%s6935_s8 + $0xa8] sm:$0xff]  ;;  %v6753_v47 = vld [vmem:[%s7988_s1 + $0x10] sm:$0xff]  }
  0x1d   : > { %5890 = vmatpush3.bf16.msra.mxu0 %v6738_v7  ;;  %5603 = vmatprep.subr.bf16.mxu1 %v6739_v8  ;;  %v448_v0 = vsel %vm436_vm0, %v443_v53, %v447_v49  ;;  %v2255_v1 = vor.u32 %v2254_v54, %v2250_v44  ;;  %v2263_v3 = vor.u32 %v2261_v52, %v2259_v58  ;;  %v184_v7 = vld [vmem:[%s6935_s8 + $0x70] sm:$0xff]  ;;  %v251_v12 = vmax.f32 %v183_v63, 0.0  ;;  %v6749_v32 = vld [vmem:[%s7988_s1 + $0x148] sm:$0xff]   ;;  %v193_v44 = vld [vmem:[%s6935_s8 + $0xb8] sm:$0xff] }
  0x1e   : > { %5891 = vmatprep.subr.bf16.mxu0 %v6740_v9  ;;  %5611 = vmatprep.mubr.bf16.mxu1 %v448_v0  ;;  %345 = vst [vmem:[#allocation2 + $0x28] sm:$0xff] %v6983_v2  ;;  %v2271_v16 = vor.u32 %v2269_v62, %v2267_v4  ;;  %v2277_v17 = vshrl.u32 %v6983_v2, 16  ;;  %v252_v18 = vmax.f32 %v184_v7, 0.0  ;;  %v254_v23 = vmax.f32 %v186_v13, 0.0  ;;  %v6750_v35 = vld [vmem:[%s7988_s1 + $0x8] sm:$0xff]   ;;  %v194_v49 = vld [vmem:[%s6935_s8 + $0xc0] sm:$0xff] }
  0x1f   : > { %v6997_v15 = vsel %vm436_vm0, %v2263_v3, %v2267_v4  ;;  %v7001_v21 = vpack.c.bf16 %v251_v12, %v250_v6  ;;  %v255_v27 = vmax.f32 %v187_v14, 0.0  ;;  %v258_v30 = vmax.f32 %v190_v25, 0.0  ;;  %v6751_v50 = vld [vmem:[%s7988_s1 + $0x150] sm:$0xff]   ;;  %v195_v56 = vld [vmem:[%s6935_s8 + $0xc8] sm:$0xff]  ;;  %v198_v63 = vld [vmem:[%s6935_s8 + $0xe0] sm:$0xff] }
  0x20   : > { %5604 = vmatpush3.bf16.msra.mxu1 %v6739_v8  ;;  %v185_v8 = vld [vmem:[%s6935_s8 + $0x78] sm:$0xff]  ;;  %v259_v40 = vmax.f32 %v191_v26, 0.0  ;;  %v261_v55 = vmax.f32 %v193_v44, 0.0  ;;  %v196_v57 = vld [vmem:[%s6935_s8 + $0xd0] sm:$0xff]  ;;  %v262_v62 = vmax.f32 %v194_v49, 0.0  ;;  %v199_v4 = vld [vmem:[%s6935_s8 + $0xe8] sm:$0xff] }
  0x21   : > { %5892 = vmatpush3.bf16.msra.mxu0 %v6740_v9  ;;  %5605 = vmatprep.subr.bf16.mxu1 %v6741_v10  ;;  %v2260_v9 = vsel %vm436_vm0, %v2255_v1, %v2259_v58  ;;  %v253_v22 = vmax.f32 %v185_v8, 0.0  ;;  %346 = vst [vmem:[#allocation2 + $0x30] sm:$0xff] %v7001_v21  ;;  %v2281_v33 = vshll.u32 %v7001_v21, 16  ;;  %v2285_v36 = vshrl.u32 %v7001_v21, 16  ;;  %v197_v58 = vld [vmem:[%s6935_s8 + $0xd8] sm:$0xff]  ;;  %v6754_v25 = vld [vmem:[%s7988_s1 + $0x160] sm:$0xff]  }
  0x22   : > { %5893 = vmatprep.subr.bf16.mxu0 %v6742_v11  ;;  %5899 = vmatprep.mubr.bf16.mxu0 %v2260_v9  ;;  %v7018_v37 = vpack.c.bf16 %v255_v27, %v254_v23  ;;  %v7029_v46 = vpack.c.bf16 %v259_v40, %v258_v30  ;;  %v263_v6 = vmax.f32 %v195_v56, 0.0  ;;  %v264_v7 = vmax.f32 %v196_v57, 0.0  ;;  %v6759_v26 = vld [vmem:[%s7988_s1 + $0x20] sm:$0xff]   ;;  %v6757_v56 = vld [vmem:[%s7988_s1 + $0x170] sm:$0xff]  }
  0x23   : > { %v7012_v34 = vpack.c.bf16 %v253_v22, %v252_v18  ;;  %v265_v8 = vmax.f32 %v197_v58, 0.0  ;;  %v203_v22 = vld [vmem:[%s6935_s8 + $0x108] sm:$0xff]  ;;  %v208_v58 = vld [vmem:[%s6935_s8 + $0x130] sm:$0xff] }
  0x24   : > { %5606 = vmatpush3.bf16.msra.mxu1 %v6741_v10  ;;  %v456_v10 = vsel %vm436_vm0, %v451_v59, %v2254_v54  ;;  %348 = vst [vmem:[#allocation2 + $0x40] sm:$0xff] %v7018_v37  ;;  %350 = vst [vmem:[#allocation2 + $0x50] sm:$0xff] %v7029_v46  ;;  %v2297_v59 = vshll.u32 %v7018_v37, 16  ;;  %v2301_v61 = vshrl.u32 %v7018_v37, 16  ;;  %v7062_v13 = vpack.c.bf16 %v263_v6, %v262_v62 }
  0x25   : > { %5894 = vmatpush3.bf16.msra.mxu0 %v6742_v11  ;;  %5607 = vmatprep.subr.bf16.mxu1 %v6743_v19  ;;  %v2273_v11 = vshll.u32 %v6983_v2, 16  ;;  %347 = vst [vmem:[#allocation2 + $0x38] sm:$0xff] %v7012_v34  ;;  %v2289_v43 = vshll.u32 %v7012_v34, 16  ;;  %v2293_v54 = vshrl.u32 %v7012_v34, 16  ;;  %v7064_v14 = vpack.c.bf16 %v265_v8, %v264_v7 }
  0x26   : > { %5895 = vmatprep.subr.bf16.mxu0 %v6744_v24  ;;  %v2299_v12 = vrot.slane %v2297_v59, 1  ;;  %352 = vst [vmem:[#allocation2 + $0x60] sm:$0xff] %v7062_v13  ;;  %v2317_v40 = vshrl.u32 %v7029_v46, 16  ;;  %v2329_v62 = vshll.u32 %v7062_v13, 16  ;;  %v2333_v7 = vshrl.u32 %v7062_v13, 16 }
  0x27   : > { %v2275_v20 = vrot.slane %v2273_v11, 1  ;;  %v2291_v53 = vrot.slane %v2289_v43, 1  ;;  %v201_v11 = vld [vmem:[%s6935_s8 + $0xf8] sm:$0xff]  ;;  %353 = vst [vmem:[#allocation2 + $0x68] sm:$0xff] %v7064_v14  ;;  %v276_v8 = vmax.f32 %v208_v58, 0.0  ;;  %v7163_v58 = vld [vmem:[%s7988_s1 + $0x80] sm:$0xff]  }
  0x28   : > { %5608 = vmatpush3.bf16.msra.mxu1 %v6743_v19  ;;  %v188_v19 = vld [vmem:[%s6935_s8 + $0x90] sm:$0xff]  ;;  %v2303_v23 = vor.u32 %v2301_v61, %v2299_v12  ;;  %v205_v43 = vld [vmem:[%s6935_s8 + $0x118] sm:$0xff] }
  0x29   : > { %5896 = vmatpush3.bf16.msra.mxu0 %v6744_v24  ;;  %5609 = vmatprep.subr.bf16.mxu1 %v6745_v42  ;;  %v189_v24 = vld [vmem:[%s6935_s8 + $0x98] sm:$0xff]  ;;  %v256_v28 = vmax.f32 %v188_v19, 0.0  ;;  %v2276_v31 = vsel %vm436_vm0, %v2271_v16, %v2275_v20  ;;  %v2279_v45 = vor.u32 %v2277_v17, %v2275_v20  ;;  %v266_v16 = vmax.f32 %v198_v63, 0.0  ;;  %v202_v20 = vld [vmem:[%s6935_s8 + $0x100] sm:$0xff] }
  0x2a   : > { %5897 = vmatprep.subr.bf16.mxu0 %v6746_v48  ;;  %v257_v29 = vmax.f32 %v189_v24, 0.0  ;;  %v267_v17 = vmax.f32 %v199_v4, 0.0  ;;  %v269_v19 = vmax.f32 %v201_v11, 0.0  ;;  %v270_v30 = vmax.f32 %v202_v20, 0.0  ;;  %v6758_v63 = vld [vmem:[%s7988_s1 + $0x178] sm:$0xff]   ;;  %v211_v4 = vld [vmem:[%s6935_s8 + $0x148] sm:$0xff] }
  0x2b   : > { %v273_v49 = vmax.f32 %v205_v43, 0.0  ;;  %v213_v20 = vld [vmem:[%s6935_s8 + $0x158] sm:$0xff] }
  0x2c   : > { %5610 = vmatpush3.bf16.msra.mxu1 %v6745_v42  ;;  %v7020_v38 = vpack.c.bf16 %v257_v29, %v256_v28  ;;  %v2283_v42 = vrot.slane %v2281_v33, 1  ;;  %v7076_v27 = vpack.c.bf16 %v267_v17, %v266_v16  ;;  %v2313_v29 = vshll.u32 %v7029_v46, 16  ;;  %v212_v17 = vld [vmem:[%s6935_s8 + $0x150] sm:$0xff] }
  0x2d   : > { %5898 = vmatpush3.bf16.msra.mxu0 %v6746_v48  ;;  %5667 = vmatprep.subr.bf16.mxu1 %v6747_v60  ;;  %v260_v48 = vmax.f32 %v192_v41, 0.0 }
  0x2e   : > { %5955 = vmatprep.subr.bf16.mxu0 %v6748_v5  ;;  %349 = vst [vmem:[#allocation2 + $0x48] sm:$0xff] %v7020_v38  ;;  %v2287_v52 = vor.u32 %v2285_v36, %v2283_v42  ;;  %v2284_v0 = vsel %vm436_vm0, %v2279_v45, %v2283_v42  ;;  %v2305_v1 = vshll.u32 %v7020_v38, 16  ;;  %v2309_v33 = vshrl.u32 %v7020_v38, 16  ;;  %354 = vst [vmem:[#allocation2 + $0x70] sm:$0xff] %v7076_v27  ;;  %v6755_v42 = vld [vmem:[%s7988_s1 + $0x168] sm:$0xff]  }
  0x2f   : > { %5612 = vmatmul.mubr.bf16.vlgmr.msra.gmra.mrb[0].mxu1 %v456_v10  ;;  %v7051_v3 = vpack.c.bf16 %v261_v55, %v260_v48  ;;  %v6756_v10 = vld [vmem:[%s7988_s1 + $0x18] sm:$0xff]   ;;  %v6761_v45 = vld [vmem:[%s7988_s1 + $0x28] sm:$0xff]  }
  0x30   : > { %5900 = vmatmul.mubr.bf16.vlgmr.msra.gmra.mrb[0].mxu0 %v6997_v15  ;;  %5668 = vmatpush3.bf16.msra.mxu1 %v6747_v60  ;;  %v6752_v60 = vld [vmem:[%s7988_s1 + $0x158] sm:$0xff]   ;;  %v2307_v24 = vrot.slane %v2305_v1, 1  ;;  %v210_v1 = vld [vmem:[%s6935_s8 + $0x140] sm:$0xff] }
  0x31   : > { %5956 = vmatpush3.bf16.msra.mxu0 %v6748_v5  ;;  %5615 = vmatprep.mubr.bf16.mxu1 %v2260_v9  ;;  %v2292_v5 = vsel %vm436_vm0, %v2287_v52, %v2291_v53  ;;  %v200_v9 = vld [vmem:[%s6935_s8 + $0xf0] sm:$0xff]  ;;  %351 = vst [vmem:[#allocation2 + $0x58] sm:$0xff] %v7051_v3  ;;  %v2321_v41 = vshll.u32 %v7051_v3, 16  ;;  %v2325_v61 = vshrl.u32 %v7051_v3, 16  ;;  %v278_v16 = vmax.f32 %v210_v1, 0.0 }
  0x32   : > { %5903 = vmatprep.mubr.bf16.mxu0 %v2276_v31  ;;  %5957 = vmatprep.subr.bf16.mxu0 %v6749_v32  ;;  %v268_v18 = vmax.f32 %v200_v9, 0.0  ;;  %v2308_v36 = vsel %vm436_vm0, %v2303_v23, %v2307_v24  ;;  %v2311_v52 = vor.u32 %v2309_v33, %v2307_v24  ;;  %v214_v24 = vld [vmem:[%s6935_s8 + $0x160] sm:$0xff]  ;;  %v281_v33 = vmax.f32 %v213_v20, 0.0  ;;  %v2866_v20 = vld [vmem:[#allocation2 + $0x10] sm:$0xfe] }
  0x33   : > { %5669 = vmatprep.subr.bf16.mxu1 %v6750_v35  ;;  %v2323_v55 = vrot.slane %v2321_v41, 1 }
  0x34   : > { %5670 = vmatpush3.bf16.msra.mxu1 %v6750_v35  ;;  %v7078_v28 = vpack.c.bf16 %v269_v19, %v268_v18  ;;  %v204_v35 = vld [vmem:[%s6935_s8 + $0x110] sm:$0xff]  ;;  %v2331_v18 = vrot.slane %v2329_v62, 1 }
  0x35   : > { %5958 = vmatpush3.bf16.msra.mxu0 %v6749_v32  ;;  %5671 = vmatprep.subr.bf16.mxu1 %v6753_v47  ;;  %v272_v48 = vmax.f32 %v204_v35, 0.0  ;;  %v216_v35 = vld [vmem:[%s6935_s8 + $0x170] sm:$0xff] }
  0x36   : > { %5959 = vmatprep.subr.bf16.mxu0 %v6751_v50  ;;  %355 = vst [vmem:[#allocation2 + $0x78] sm:$0xff] %v7078_v28 }
  0x37   : > { %5616 = vmatmul.mubr.bf16.gmra.mrb[4].mxu1 %v6997_v15  ;;  %v2295_v15 = vor.u32 %v2293_v54, %v2291_v53  ;;  %v207_v53 = vld [vmem:[%s6935_s8 + $0x128] sm:$0xff]  ;;  %v7104_v57 = vpack.c.bf16 %v273_v49, %v272_v48  ;;  %v2349_v49 = vshrl.u32 %v7076_v27, 16 }
  0x38   : > { %5904 = vmatmul.mubr.bf16.gmra.mrb[4].mxu0 %v2284_v0  ;;  %5619 = vmatprep.mubr.bf16.mxu1 %v2276_v31  ;;  %v271_v31 = vmax.f32 %v203_v22, 0.0  ;;  %v2327_v22 = vor.u32 %v2325_v61, %v2323_v55 }
  0x39   : > { %5907 = vmatprep.mubr.bf16.mxu0 %v2292_v5  ;;  %5960 = vmatpush3.bf16.msra.mxu0 %v6751_v50  ;;  %v2300_v32 = vsel %vm436_vm0, %v2295_v15, %v2299_v12  ;;  %v206_v50 = vld [vmem:[%s6935_s8 + $0x120] sm:$0xff]  ;;  %357 = vst [vmem:[#allocation2 + $0x88] sm:$0xff] %v7104_v57  ;;  %v279_v15 = vmax.f32 %v211_v4, 0.0 }
  0x3a   : > { %5961 = vmatprep.subr.bf16.mxu0 %v6752_v60  ;;  %5672 = vmatpush3.bf16.msra.mxu1 %v6753_v47  ;;  %v7093_v44 = vpack.c.bf16 %v271_v31, %v270_v30  ;;  %v2315_v47 = vrot.slane %v2313_v29, 1  ;;  %v274_v59 = vmax.f32 %v206_v50, 0.0  ;;  %v7136_v29 = vld [vmem:[%s7988_s1 + $0x180] sm:$0xff]   ;;  %v280_v30 = vmax.f32 %v212_v17, 0.0  ;;  %v215_v31 = vld [vmem:[%s6935_s8 + $0x168] sm:$0xff]  ;;  %v224_v17 = vld [vmem:[%s6935_s8 + $0x1b0] sm:$0xff] }
  0x3b   : > { %5673 = vmatprep.subr.bf16.mxu1 %v6756_v10  ;;  %v7130_v23 = vpack.c.bf16 %v279_v15, %v278_v16  ;;  %v2332_v41 = vsel %vm436_vm0, %v2327_v22, %v2331_v18  ;;  %v2353_v50 = vshll.u32 %v7078_v28, 16 }
  0x3c   : > { %356 = vst [vmem:[#allocation2 + $0x80] sm:$0xff] %v7093_v44  ;;  %v2319_v54 = vor.u32 %v2317_v40, %v2315_v47  ;;  %v2316_v6 = vsel %vm436_vm0, %v2311_v52, %v2315_v47  ;;  %v6765_v40 = vld [vmem:[%s7988_s1 + $0x38] sm:$0xff]   ;;  %v7148_v43 = vpack.c.bf16 %v281_v33, %v280_v30  ;;  %v284_v52 = vmax.f32 %v216_v35, 0.0 }
  0x3d   : > { %5962 = vmatpush3.bf16.msra.mxu0 %v6752_v60  ;;  %v209_v60 = vld [vmem:[%s6935_s8 + $0x138] sm:$0xff]  ;;  %360 = vst [vmem:[#allocation2 + $0xa0] sm:$0xff] %v7130_v23  ;;  %v2361_v16 = vshll.u32 %v7093_v44, 16  ;;  %v292_v30 = vmax.f32 %v224_v17, 0.0 }
  0x3e   : > { %5963 = vmatprep.subr.bf16.mxu0 %v6754_v25  ;;  %5674 = vmatpush3.bf16.msra.mxu1 %v6756_v10  ;;  %v2324_v9 = vsel %vm436_vm0, %v2319_v54, %v2323_v55  ;;  %v2337_v10 = vshll.u32 %v7064_v14, 16  ;;  %v277_v12 = vmax.f32 %v209_v60, 0.0  ;;  %v217_v47 = vld [vmem:[%s6935_s8 + $0x178] sm:$0xff]  ;;  %361 = vst [vmem:[#allocation2 + $0xa8] sm:$0xff] %v7148_v43  ;;  %v220_v60 = vld [vmem:[%s6935_s8 + $0x190] sm:$0xff] }
  0x3f   : > { %5620 = vmatmul.mubr.bf16.gmra.mrb[8].mxu1 %v2284_v0  ;;  %5675 = vmatprep.subr.bf16.mxu1 %v6759_v26  ;;  %v275_v0 = vmax.f32 %v207_v53, 0.0  ;;  %v218_v53 = vld [vmem:[%s6935_s8 + $0x180] sm:$0xff]  ;;  %v7186_v33 = vrot.slane %v2361_v16, 1 }
  0x40   : > { %5908 = vmatmul.mubr.bf16.gmra.mrb[8].mxu0 %v2300_v32  ;;  %5623 = vmatprep.mubr.bf16.mxu1 %v2292_v5  ;;  %v6763_v5 = vld [vmem:[%s7988_s1 + $0x30] sm:$0xff]   ;;  %v7127_v19 = vpack.c.bf16 %v277_v12, %v276_v8  ;;  %v286_v62 = vmax.f32 %v218_v53, 0.0  ;;  %v2357_v12 = vshrl.u32 %v7078_v28, 16 }
  0x41   : > { %5911 = vmatprep.mubr.bf16.mxu0 %v2308_v36  ;;  %5964 = vmatpush3.bf16.msra.mxu0 %v6754_v25  ;;  %v7123_v11 = vpack.c.bf16 %v275_v0, %v274_v59  ;;  %v2335_v25 = vor.u32 %v2333_v7, %v2331_v18  ;;  %v285_v59 = vmax.f32 %v217_v47, 0.0  ;;  %v2355_v0 = vrot.slane %v2353_v50, 1  ;;  %v222_v7 = vld [vmem:[%s6935_s8 + $0x1a0] sm:$0xff]  ;;  %7991 = vst [vmem:[#allocation3_spill] sm:$0xff] %v7186_v33 }
  0x42   : > { %5965 = vmatprep.subr.bf16.mxu0 %v6755_v42  ;;  %5676 = vmatpush3.bf16.msra.mxu1 %v6759_v26  ;;  %v2339_v26 = vrot.slane %v2337_v10, 1  ;;  %359 = vst [vmem:[#allocation2 + $0x98] sm:$0xff] %v7127_v19  ;;  %v290_v22 = vmax.f32 %v222_v7, 0.0  ;;  %v569_v47 = vshrl.u32 %v7093_v44, 16  ;;  %v2920_v7 = vrot.slane %v7001_v21, 1 }
  0x43   : > { %5677 = vmatprep.subr.bf16.mxu1 %v6761_v45  ;;  %358 = vst [vmem:[#allocation2 + $0x90] sm:$0xff] %v7123_v11  ;;  %v7167_v1 = vpack.c.bf16 %v285_v59, %v284_v52 }
  0x44   : > { %v2340_v48 = vsel %vm436_vm0, %v2335_v25, %v2339_v26 }
  0x45   : > { %5966 = vmatpush3.bf16.msra.mxu0 %v6755_v42  ;;  %v2341_v42 = vshrl.u32 %v7064_v14, 16  ;;  %363 = vst [vmem:[#allocation2 + $0xb8] sm:$0xff] %v7167_v1 }
  0x46   : > { %5967 = vmatprep.subr.bf16.mxu0 %v6757_v56  ;;  %5678 = vmatpush3.bf16.msra.mxu1 %v6761_v45  ;;  %v283_v45 = vmax.f32 %v215_v31, 0.0  ;;  %v226_v31 = vld [vmem:[%s6935_s8 + $0x1c0] sm:$0xff] }
  0x47   : > { %5624 = vmatmul.mubr.bf16.gmra.mrb[12].mxu1 %v2300_v32  ;;  %5679 = vmatprep.subr.bf16.mxu1 %v6763_v5  ;;  %v2345_v32 = vshll.u32 %v7076_v27, 16  ;;  %v2343_v61 = vor.u32 %v2341_v42, %v2339_v26  ;;  %v225_v26 = vld [vmem:[%s6935_s8 + $0x1b8] sm:$0xff] }
  0x48   : > { %5912 = vmatmul.mubr.bf16.gmra.mrb[12].mxu0 %v2316_v6  ;;  %5627 = vmatprep.mubr.bf16.mxu1 %v2308_v36  ;;  %v282_v36 = vmax.f32 %v214_v24, 0.0  ;;  %v293_v42 = vmax.f32 %v225_v26, 0.0 }
  0x49   : > { %5915 = vmatprep.mubr.bf16.mxu0 %v2324_v9  ;;  %5968 = vmatpush3.bf16.msra.mxu0 %v6757_v56  ;;  %v2347_v54 = vrot.slane %v2345_v32, 1  ;;  %v219_v56 = vld [vmem:[%s6935_s8 + $0x188] sm:$0xff]  ;;  %v2359_v32 = vor.u32 %v2357_v12, %v2355_v0 }
  0x4a   : > { %5969 = vmatprep.subr.bf16.mxu0 %v6758_v63  ;;  %5680 = vmatpush3.bf16.msra.mxu1 %v6763_v5  ;;  %v7157_v55 = vpack.c.bf16 %v283_v45, %v282_v36  ;;  %v287_v4 = vmax.f32 %v219_v56, 0.0  ;;  %v221_v5 = vld [vmem:[%s6935_s8 + $0x198] sm:$0xff]  ;;  %v227_v36 = vld [vmem:[%s6935_s8 + $0x1c8] sm:$0xff]  ;;  %v294_v45 = vmax.f32 %v226_v31, 0.0  ;;  %v571_v56 = vor.u32 %v7186_v33, %v569_v47 }
  0x4b   : > { %5681 = vmatprep.subr.bf16.mxu1 %v6765_v40  ;;  %v2348_v10 = vsel %vm436_vm0, %v2343_v61, %v2347_v54  ;;  %v289_v15 = vmax.f32 %v221_v5, 0.0  ;;  %v295_v50 = vmax.f32 %v227_v36, 0.0  ;;  %v2364_v52 = vsel %vm436_vm0, %v2359_v32, %v7186_v33  ;;  %v228_v61 = vld [vmem:[%s6935_s8 + $0x1d0] sm:$0xff]  ;;  %v231_v5 = vld [vmem:[%s6935_s8 + $0x1e8] sm:$0xff] }
  0x4c   : > { %362 = vst [vmem:[#allocation2 + $0xb0] sm:$0xff] %v7157_v55  ;;  %v7173_v8 = vpack.c.bf16 %v287_v4, %v286_v62  ;;  %v229_v62 = vld [vmem:[%s6935_s8 + $0x1d8] sm:$0xff]  ;;  %v230_v4 = vld [vmem:[%s6935_s8 + $0x1e0] sm:$0xff]  ;;  %v296_v12 = vmax.f32 %v228_v61, 0.0  ;;  %v299_v17 = vmax.f32 %v231_v5, 0.0  ;;  %v2924_v31 = vrot.slane %v7018_v37, 1 }
  0x4d   : > { %5970 = vmatpush3.bf16.msra.mxu0 %v6758_v63  ;;  %v2351_v63 = vor.u32 %v2349_v49, %v2347_v54  ;;  %v7198_v49 = vpack.c.bf16 %v293_v42, %v292_v30  ;;  %v7205_v53 = vpack.c.bf16 %v295_v50, %v294_v45  ;;  %v2916_v54 = vrot.slane %v6971_v51, 1  ;;  %v6764_v32 = vld [vmem:[%s7988_s1 + $0x190] sm:$0xff]   ;;  %v6768_v61 = vld [vmem:[%s7988_s1 + $0x1a0] sm:$0xff]  }
  0x4e   : > { %6027 = vmatprep.subr.bf16.mxu0 %v7136_v29  ;;  %5682 = vmatpush3.bf16.msra.mxu1 %v6765_v40  ;;  %364 = vst [vmem:[#allocation2 + $0xc0] sm:$0xff] %v7173_v8  ;;  %v2913_v40 = vrot.slane %v2866_v20, 1  ;;  %v297_v16 = vmax.f32 %v229_v62, 0.0  ;;  %v593_v30 = vshrl.u32 %v7127_v19, 16  ;;  %v601_v42 = vshrl.u32 %v7130_v23, 16 }
  0x4f   : > { %5628 = vmatmul.mubr.bf16.gmra.mrb[16].mxu1 %v2316_v6  ;;  %5739 = vmatprep.subr.bf16.mxu1 %v7163_v58  ;;  %v288_v6 = vmax.f32 %v220_v60, 0.0  ;;  %v2356_v18 = vsel %vm436_vm0, %v2351_v63, %v2355_v0  ;;  %367 = vst [vmem:[#allocation2 + $0xd8] sm:$0xff] %v7198_v49  ;;  %v2918_v60 = vrot.slane %v6983_v2, 1  ;;  %368 = vst [vmem:[#allocation2 + $0xe0] sm:$0xff] %v7205_v53  ;;  %v577_v63 = vshrl.u32 %v7104_v57, 16  ;;  %v6762_v2 = vld [vmem:[%s7988_s1 + $0x188] sm:$0xff]  }
  0x50   : > { %5916 = vmatmul.mubr.bf16.gmra.mrb[16].mxu0 %v2332_v41  ;;  %5631 = vmatprep.mubr.bf16.mxu1 %v2324_v9  ;;  %v223_v9 = vld [vmem:[%s6935_s8 + $0x1a8] sm:$0xff]  ;;  %v581_v0 = vshll.u32 %v7123_v11, 16  ;;  %v7232_v21 = vpack.c.bf16 %v297_v16, %v296_v12  ;;  %v605_v37 = vshll.u32 %v7148_v43, 16 }
  0x51   : > { %5919 = vmatprep.mubr.bf16.mxu0 %v2340_v48  ;;  %v7182_v24 = vpack.c.bf16 %v289_v15, %v288_v6  ;;  %v291_v25 = vmax.f32 %v223_v9, 0.0  ;;  %v585_v9 = vshrl.u32 %v7123_v11, 16  ;;  %v298_v15 = vmax.f32 %v230_v4, 0.0 }
  0x52   : > { %v583_v20 = vrot.slane %v581_v0, 1  ;;  %369 = vst [vmem:[#allocation2 + $0xe8] sm:$0xff] %v7232_v21  ;;  %v7254_v47 = vsel %vm1350_vm1, %v2918_v60, %v2920_v7 }
  0x53   : > { %365 = vst [vmem:[#allocation2 + $0xc8] sm:$0xff] %v7182_v24  ;;  %v7189_v35 = vpack.c.bf16 %v291_v25, %v290_v22  ;;  %v2922_v22 = vrot.slane %v7012_v34, 1  ;;  %v7234_v25 = vpack.c.bf16 %v299_v17, %v298_v15  ;;  %v2930_v15 = vrot.slane %v7051_v3, 1  ;;  %v6772_v17 = vld [vmem:[%s7988_s1 + $0x1b0] sm:$0xff]  }
  0x54   : > { %v587_v34 = vor.u32 %v585_v9, %v583_v20  ;;  %v637_v3 = vshll.u32 %v7182_v24, 16 }
  0x55   : > { %366 = vst [vmem:[#allocation2 + $0xd0] sm:$0xff] %v7189_v35  ;;  %370 = vst [vmem:[#allocation2 + $0xf0] sm:$0xff] %v7234_v25  ;;  %v7258_v50 = vsel %vm1350_vm1, %v2920_v7, %v2922_v22  ;;  %v7272_v4 = vsel %vm1350_vm1, %v2922_v22, %v2924_v31  ;;  %v6770_v7 = vld [vmem:[%s7988_s1 + $0x1a8] sm:$0xff]  }
  0x57   : > { %5632 = vmatmul.mubr.bf16.gmra.mrb[20].mxu1 %v2332_v41  ;;  %v7193_v41 = vrot.slane %v6959_v39, 1 }
  0x58   : > { %5920 = vmatmul.mubr.bf16.gmra.mrb[20].mxu0 %v2348_v10  ;;  %5635 = vmatprep.mubr.bf16.mxu1 %v2340_v48  ;;  %v573_v48 = vshll.u32 %v7104_v57, 16 }
  0x59   : > { %5923 = vmatprep.mubr.bf16.mxu0 %v2356_v18  ;;  %v2915_v39 = vsel %vm1350_vm1, %v2913_v40, %v7193_v41  ;;  %v7219_v51 = vsel %vm1350_vm1, %v7193_v41, %v2916_v54  ;;  %v597_v40 = vshll.u32 %v7130_v23, 16 }
  0x5a   : > { %v575_v59 = vrot.slane %v573_v48, 1 }
  0x5c   : > { %v576_v6 = vsel %vm436_vm0, %v571_v56, %v575_v59  ;;  %v579_v26 = vor.u32 %v577_v63, %v575_v59  ;;  %v607_v56 = vrot.slane %v605_v37, 1  ;;  %v609_v59 = vshrl.u32 %v7148_v43, 16 }
  0x5d   : > { %v617_v63 = vshrl.u32 %v7157_v55, 16 }
  0x5e   : > { %v584_v45 = vsel %vm436_vm0, %v579_v26, %v583_v20  ;;  %v611_v9 = vor.u32 %v609_v59, %v607_v56  ;;  %v629_v20 = vshll.u32 %v7173_v8, 16  ;;  %v625_v26 = vshrl.u32 %v7167_v1, 16 }
  0x5f   : > { %5636 = vmatmul.mubr.bf16.gmra.mrb[24].mxu1 %v2348_v10  ;;  %v589_v10 = vshll.u32 %v7127_v19, 16 }
  0x60   : > { %5924 = vmatmul.mubr.bf16.gmra.mrb[24].mxu0 %v2364_v52  ;;  %5639 = vmatprep.mubr.bf16.mxu1 %v2356_v18  ;;  %v7229_v18 = vsel %vm1350_vm1, %v2916_v54, %v2918_v60  ;;  %v613_v60 = vshll.u32 %v7157_v55, 16 }
  0x61   : > { %5971 = vmatprep.mubr.bf16.mxu0 %v2915_v39  ;;  %v591_v36 = vrot.slane %v589_v10, 1  ;;  %v2926_v39 = vrot.slane %v7020_v38, 1  ;;  %v621_v38 = vshll.u32 %v7167_v1, 16  ;;  %v2928_v10 = vrot.slane %v7029_v46, 1 }
  0x63   : > { %v592_v48 = vsel %vm436_vm0, %v587_v34, %v591_v36  ;;  %v595_v54 = vor.u32 %v593_v30, %v591_v36  ;;  %v623_v16 = vrot.slane %v621_v38, 1  ;;  %v7292_v30 = vsel %vm1350_vm1, %v2926_v39, %v2928_v10  ;;  %v6774_v34 = vld [vmem:[%s7988_s1 + $0x1b8] sm:$0xff]  }
  0x64   : > { %v631_v36 = vrot.slane %v629_v20, 1 }
  0x67   : > { %5640 = vmatmul.mubr.bf16.gmra.mrb[28].mxu1 %v2364_v52  ;;  %v599_v52 = vrot.slane %v597_v40, 1  ;;  %v627_v40 = vor.u32 %v625_v26, %v623_v16 }
  0x68   : > { %5972 = vmatmul.mubr.bf16.vlgmr.msra.gmra.mrb[0].mxu0 %v7219_v51  ;;  %5643 = vmatprep.mubr.bf16.mxu1 %v576_v6  ;;  %v7276_v6 = vsel %vm1350_vm1, %v2924_v31, %v2926_v39  ;;  %v633_v31 = vshrl.u32 %v7173_v8, 16 }
  0x69   : > { %6028 = vmatpush3.bf16.msra.mxu0 %v7136_v29  ;;  %5975 = vmatprep.mubr.bf16.mxu0 %v7229_v18  ;;  %v6766_v29 = vld [vmem:[%s7988_s1 + $0x198] sm:$0xff]   ;;  %v603_v62 = vor.u32 %v601_v42, %v599_v52  ;;  %v600_v0 = vsel %vm436_vm0, %v595_v54, %v599_v52  ;;  %v2932_v42 = vrot.slane %v7062_v13, 1  ;;  %v645_v52 = vshll.u32 %v7189_v35, 16 }
  0x6a   : > { %6029 = vmatprep.subr.bf16.mxu0 %v6762_v2  ;;  %v635_v37 = vor.u32 %v633_v31, %v631_v36  ;;  %v632_v39 = vsel %vm436_vm0, %v627_v40, %v631_v36  ;;  %v641_v54 = vshrl.u32 %v7182_v24, 16  ;;  %v2942_v31 = vrot.slane %v7104_v57, 1  ;;  %v6803_v40 = vld [vmem:[#allocation2] sm:$0xff] }
  0x6b   : > { %v608_v5 = vsel %vm436_vm0, %v603_v62, %v607_v56  ;;  %v7316_v56 = vsel %vm1350_vm1, %v2930_v15, %v2932_v42 }
  0x6d   : > { %6030 = vmatpush3.bf16.msra.mxu0 %v6762_v2  ;;  %v615_v2 = vrot.slane %v613_v60, 1  ;;  %v649_v60 = vshrl.u32 %v7189_v35, 16 }
  0x6e   : > { %6031 = vmatprep.subr.bf16.mxu0 %v6764_v32 }
  0x6f   : > { %5644 = vmatmul.mubr.bf16.gmra.mrb[32].mxu1 %v584_v45  ;;  %v619_v12 = vor.u32 %v617_v63, %v615_v2  ;;  %v616_v22 = vsel %vm436_vm0, %v611_v9, %v615_v2  ;;  %v639_v45 = vrot.slane %v637_v3, 1  ;;  %v647_v63 = vrot.slane %v645_v52, 1  ;;  %v7328_v2 = vld [vmem:[#allocation2 + $0xe0] sm:$0x1]  ;;  %v6769_v52 = vld [vmem:[%s7988_s1 + $0x88] sm:$0xff]  }
  0x70   : > { %5976 = vmatmul.mubr.bf16.gmra.mrb[4].mxu0 %v7254_v47  ;;  %5647 = vmatprep.mubr.bf16.mxu1 %v592_v48  ;;  %v7310_v48 = vld [vmem:[%s7988_s1 + $0x1c0] sm:$0xff]   ;;  %v2938_v9 = vrot.slane %v7078_v28, 1 }
  0x71   : > { %5979 = vmatprep.mubr.bf16.mxu0 %v7258_v50  ;;  %6032 = vmatpush3.bf16.msra.mxu0 %v6764_v32  ;;  %v624_v46 = vsel %vm436_vm0, %v619_v12, %v623_v16  ;;  %v7298_v32 = vsel %vm1350_vm1, %v2928_v10, %v2930_v15  ;;  %v640_v59 = vsel %vm436_vm0, %v635_v37, %v639_v45  ;;  %v657_v12 = vshrl.u32 %v7198_v49, 16 }
  0x72   : > { %6033 = vmatprep.subr.bf16.mxu0 %v6766_v29  ;;  %v643_v38 = vor.u32 %v641_v54, %v639_v45  ;;  %v661_v16 = vshll.u32 %v7328_v2, 16  ;;  %v2946_v37 = vrot.slane %v7127_v19, 1  ;;  %v7370_v54 = vld [vmem:[#allocation2 + $0x10] sm:$0xff] }
  0x74   : > { %v648_v10 = vsel %vm436_vm0, %v643_v38, %v647_v63  ;;  %v663_v26 = vrot.slane %v661_v16, 1  ;;  %v6773_v38 = vld [vmem:[%s7988_s1 + $0x98] sm:$0xff]  }
  0x75   : > { %6034 = vmatpush3.bf16.msra.mxu0 %v6766_v29  ;;  %v2934_v29 = vrot.slane %v7064_v14, 1 }
  0x76   : > { %6035 = vmatprep.subr.bf16.mxu0 %v6768_v61 }
  0x77   : > { %5648 = vmatmul.mubr.bf16.gmra.mrb[36].mxu1 %v600_v0  ;;  %v7322_v62 = vsel %vm1350_vm1, %v2932_v42, %v2934_v29  ;;  %v2936_v0 = vrot.slane %v7076_v27, 1  ;;  %v2944_v42 = vrot.slane %v7123_v11, 1 }
  0x78   : > { %5980 = vmatmul.mubr.bf16.gmra.mrb[8].mxu0 %v7272_v4  ;;  %5651 = vmatprep.mubr.bf16.mxu1 %v608_v5  ;;  %v651_v5 = vor.u32 %v649_v60, %v647_v63  ;;  %v6771_v60 = vld [vmem:[%s7988_s1 + $0x90] sm:$0xff]  }
  0x79   : > { %5983 = vmatprep.mubr.bf16.mxu0 %v7276_v6  ;;  %6036 = vmatpush3.bf16.msra.mxu0 %v6768_v61  ;;  %v653_v61 = vshll.u32 %v7198_v49, 16  ;;  %v7335_v15 = vsel %vm1350_vm1, %v2934_v29, %v2936_v0  ;;  %v7339_v20 = vsel %vm1350_vm1, %v2936_v0, %v2938_v9  ;;  %v7357_v45 = vsel %vm1350_vm1, %v2942_v31, %v2944_v42  ;;  %v6806_v0 = vld [vmem:[#allocation2 + $0x18] sm:$0xff] }
  0x7a   : > { %6037 = vmatprep.subr.bf16.mxu0 %v6770_v7  ;;  %v7360_v29 = vsel %vm1350_vm1, %v2944_v42, %v2946_v37 }
  0x7d   : > { %6038 = vmatpush3.bf16.msra.mxu0 %v6770_v7  ;;  %v655_v7 = vrot.slane %v653_v61, 1  ;;  %v2950_v61 = vrot.slane %v7148_v43, 1 }
  0x7e   : > { %6039 = vmatprep.subr.bf16.mxu0 %v6772_v17 }
  0x7f   : > { %5652 = vmatmul.mubr.bf16.gmra.mrb[40].mxu1 %v616_v22  ;;  %v659_v22 = vor.u32 %v657_v12, %v655_v7 }
  0x80   : > { %5984 = vmatmul.mubr.bf16.gmra.mrb[12].mxu0 %v7292_v30  ;;  %5655 = vmatprep.mubr.bf16.mxu1 %v624_v46  ;;  %v2940_v46 = vrot.slane %v7093_v44, 1 }
  0x81   : > { %5987 = vmatprep.mubr.bf16.mxu0 %v7298_v32  ;;  %6040 = vmatpush3.bf16.msra.mxu0 %v6772_v17  ;;  %v656_v17 = vsel %vm436_vm0, %v651_v5, %v655_v7  ;;  %v664_v3 = vsel %vm436_vm0, %v659_v22, %v663_v26  ;;  %v6807_v5 = vld [vmem:[#allocation2 + $0x20] sm:$0xff]  ;;  %v2952_v7 = vrot.slane %v7157_v55, 1  ;;  %v6808_v22 = vld [vmem:[#allocation2 + $0x28] sm:$0xff]  ;;  %v6809_v26 = vld [vmem:[#allocation2 + $0x30] sm:$0xff] }
  0x82   : > { %6041 = vmatprep.subr.bf16.mxu0 %v6774_v34  ;;  %v7350_v36 = vsel %vm1350_vm1, %v2940_v46, %v2942_v31  ;;  %v2958_v31 = vrot.slane %v7182_v24, 1 }
  0x83   : > { %v7396_v12 = vsel %vm1350_vm1, %v2950_v61, %v2952_v7 }
  0x85   : > { %6042 = vmatpush3.bf16.msra.mxu0 %v6774_v34  ;;  %v7347_v34 = vsel %vm1350_vm1, %v2938_v9, %v2940_v46  ;;  %v2954_v9 = vrot.slane %v7167_v1, 1  ;;  %v2956_v46 = vrot.slane %v7173_v8, 1 }
  0x86   : > { %6099 = vmatprep.subr.bf16.mxu0 %v7310_v48 }
  0x87   : > { %5656 = vmatmul.mubr.bf16.gmra.mrb[44].mxu1 %v632_v39  ;;  %v7365_v39 = vld [vmem:[#allocation2 + $0x8] sm:$0xff]  ;;  %v7399_v16 = vsel %vm1350_vm1, %v2952_v7, %v2954_v9  ;;  %v7415_v42 = vsel %vm1350_vm1, %v2956_v46, %v2958_v31 }
  0x88   : > { %5988 = vmatmul.mubr.bf16.gmra.mrb[16].mxu0 %v7316_v56  ;;  %5659 = vmatprep.mubr.bf16.mxu1 %v640_v59  ;;  %v2948_v59 = vrot.slane %v7130_v23, 1 }
  0x89   : > { %5991 = vmatprep.mubr.bf16.mxu0 %v7322_v62 }
  0x8a   : > { %v7380_v63 = vsel %vm1350_vm1, %v2946_v37, %v2948_v59  ;;  %v6781_v37 = vld [vmem:[%s7988_s1 + $0xb8] sm:$0xff]  }
  0x8f   : > { %5660 = vmatmul.mubr.bf16.gmra.mrb[48].mxu1 %v648_v10  ;;  %v6775_v10 = vld [vmem:[%s7988_s1 + $0xa0] sm:$0xff]  }
  0x90   : > { %5992 = vmatmul.mubr.bf16.gmra.mrb[20].mxu0 %v7335_v15  ;;  %5663 = vmatprep.mubr.bf16.mxu1 %v656_v17  ;;  %v6777_v17 = vld [vmem:[%s7988_s1 + $0xa8] sm:$0xff]  }
  0x91   : > { %5995 = vmatprep.mubr.bf16.mxu0 %v7339_v20 }
  0x97   : > { %5664 = vmatmul.mubr.bf16.gmra.mrb[52].mxu1 %v664_v3  ;;  %v6779_v3 = vld [vmem:[%s7988_s1 + $0xb0] sm:$0xff]  }
  0x98   : > { %5996 = vmatmul.mubr.bf16.gmra.mrb[24].mxu0 %v7347_v34  ;;  %5683 = vmatprep.mubr.bf16.mxu1 %v6803_v40  ;;  %v7412_v40 = vsel %vm1350_vm1, %v2954_v9, %v2956_v46  ;;  %v6813_v46 = vld [vmem:[#allocation2 + $0x50] sm:$0xff] }
  0x99   : > { %5999 = vmatprep.mubr.bf16.mxu0 %v7350_v36 }
  0x9f   : > { %5684 = vmatmul.mubr.bf16.vlgmr.msra.gmra.mrb[0].mxu1 %v7365_v39 }
  0xa0   : > { %6000 = vmatmul.mubr.bf16.gmra.mrb[28].mxu0 %v7357_v45  ;;  %5740 = vmatpush3.bf16.msra.mxu1 %v7163_v58  ;;  %v7383_v58 = vsel %vm1350_vm1, %v2948_v59, %v2950_v61  ;;  %v6811_v59 = vld [vmem:[#allocation2 + $0x40] sm:$0xff]  ;;  %v7424_v61 = vrot.slane %v7198_v49, 1 }
  0xa1   : > { %5687 = vmatprep.mubr.bf16.mxu1 %v7370_v54  ;;  %6003 = vmatprep.mubr.bf16.mxu0 %v7360_v29 }
  0xa2   : > { %5741 = vmatprep.subr.bf16.mxu1 %v6769_v52 }
  0xa4   : > { %5742 = vmatpush3.bf16.msra.mxu1 %v6769_v52  ;;  %v6810_v52 = vld [vmem:[#allocation2 + $0x38] sm:$0xff] }
  0xa5   : > { %5743 = vmatprep.subr.bf16.mxu1 %v6771_v60 }
  0xa7   : > { %5688 = vmatmul.mubr.bf16.gmra.mrb[4].mxu1 %v6806_v0  ;;  %v232_v0 = vld [vmem:[%s6935_s8 + $0x1f0] sm:$0xff] }
  0xa8   : > { %6004 = vmatmul.mubr.bf16.gmra.mrb[32].mxu0 %v7380_v63  ;;  %5691 = vmatprep.mubr.bf16.mxu1 %v6807_v5  ;;  %v233_v5 = vld [vmem:[%s6935_s8 + $0x1f8] sm:$0xff]  ;;  %v300_v7 = vmax.f32 %v232_v0, 0.0 }
  0xa9   : > { %6007 = vmatprep.mubr.bf16.mxu0 %v7383_v58  ;;  %5744 = vmatpush3.bf16.msra.mxu1 %v6771_v60  ;;  %v2960_v60 = vrot.slane %v7189_v35, 1  ;;  %v301_v9 = vmax.f32 %v233_v5, 0.0 }
  0xaa   : > { %5745 = vmatprep.subr.bf16.mxu1 %v6773_v38 }
  0xad   : > { %5746 = vmatpush3.bf16.msra.mxu1 %v6773_v38  ;;  %v7429_v38 = vld [vmem:[%s7988_s1 + $0xc0] sm:$0xff]  }
  0xae   : > { %5747 = vmatprep.subr.bf16.mxu1 %v6775_v10 }
  0xaf   : > { %5692 = vmatmul.mubr.bf16.gmra.mrb[8].mxu1 %v6808_v22  ;;  %v7441_v22 = vpack.c.bf16 %v301_v9, %v300_v7  ;;  %v7453_v7 = vld [vmem:[#allocation2 + $0x20] sm:$0xff]  ;;  %v7458_v9 = vld [vmem:[#allocation2 + $0x28] sm:$0xff] }
  0xb0   : > { %6008 = vmatmul.mubr.bf16.gmra.mrb[36].mxu0 %v7396_v12  ;;  %5695 = vmatprep.mubr.bf16.mxu1 %v6809_v26  ;;  %v6812_v26 = vld [vmem:[#allocation2 + $0x48] sm:$0xff] }
  0xb1   : > { %6011 = vmatprep.mubr.bf16.mxu0 %v7399_v16  ;;  %5748 = vmatpush3.bf16.msra.mxu1 %v6775_v10  ;;  %v7434_v10 = vsel %vm1350_vm1, %v2958_v31, %v2960_v60  ;;  %371 = vst [vmem:[#allocation2 + $0xf8] sm:$0xff] %v7441_v22  ;;  %v2964_v31 = vrot.slane %v7205_v53, 1 }
  0xb2   : > { %5749 = vmatprep.subr.bf16.mxu1 %v6777_v17 }
  0xb5   : > { %5750 = vmatpush3.bf16.msra.mxu1 %v6777_v17  ;;  %v7438_v17 = vsel %vm1350_vm1, %v2960_v60, %v7424_v61  ;;  %v6814_v60 = vld [vmem:[#allocation2 + $0x58] sm:$0xff] }
  0xb6   : > { %5751 = vmatprep.subr.bf16.mxu1 %v6779_v3 }
  0xb7   : > { %5696 = vmatmul.mubr.bf16.gmra.mrb[12].mxu1 %v6810_v52 }
  0xb8   : > { %6012 = vmatmul.mubr.bf16.gmra.mrb[40].mxu0 %v7412_v40  ;;  %5699 = vmatprep.mubr.bf16.mxu1 %v6811_v59  ;;  %v2231_v59 = vld [vmem:[#allocation2 + $0xf0] sm:$0x1] }
  0xb9   : > { %6015 = vmatprep.mubr.bf16.mxu0 %v7415_v42  ;;  %5752 = vmatpush3.bf16.msra.mxu1 %v6779_v3  ;;  %v2966_v3 = vrot.slane %v7232_v21, 1  ;;  %v2968_v0 = vrot.slane %v2231_v59, 1  ;;  %v7503_v59 = vld [vmem:[#allocation2 + $0x60] sm:$0xff] }
  0xba   : > { %5753 = vmatprep.subr.bf16.mxu1 %v6781_v37 }
  0xbb   : > { %v2967_v52 = vsel %vm1350_vm1, %v2964_v31, %v2966_v3  ;;  %v2969_v5 = vsel %vm1350_vm1, %v2966_v3, %v2968_v0  ;;  %v6786_v3 = vld [vmem:[%s7988_s1 + $0x1e8] sm:$0xff]   ;;  %v7515_v0 = vld [vmem:[%s7988_s1 + $0x200] sm:$0xff]  }
  0xbd   : > { %5754 = vmatpush3.bf16.msra.mxu1 %v6781_v37  ;;  %v2965_v37 = vsel %vm1350_vm1, %v7424_v61, %v2964_v31  ;;  %v7489_v31 = vld [vmem:[#allocation2 + $0x50] sm:$0xff] }
  0xbe   : > { %5811 = vmatprep.subr.bf16.mxu1 %v7429_v38 }
  0xbf   : > { %5700 = vmatmul.mubr.bf16.gmra.mrb[16].mxu1 %v6812_v26  ;;  %v7460_v26 = vld [vmem:[#allocation2 + $0x30] sm:$0xff] }
  0xc0   : > { %6016 = vmatmul.mubr.bf16.gmra.mrb[44].mxu0 %v7434_v10  ;;  %5703 = vmatprep.mubr.bf16.mxu1 %v6813_v46  ;;  %v7475_v46 = vld [vmem:[#allocation2 + $0x40] sm:$0xff] }
  0xc1   : > { %6019 = vmatprep.mubr.bf16.mxu0 %v7438_v17 }
  0xc7   : > { %5704 = vmatmul.mubr.bf16.gmra.mrb[20].mxu1 %v6814_v60  ;;  %v6790_v60 = vld [vmem:[%s7988_s1 + $0x1f8] sm:$0xff]  }
  0xc8   : > { %6020 = vmatmul.mubr.bf16.gmra.mrb[48].mxu0 %v2965_v37  ;;  %5707 = vmatprep.mubr.bf16.mxu1 %v7062_v13  ;;  %v6778_v13 = vld [vmem:[%s7988_s1 + $0x1c8] sm:$0xff]   ;;  %v6788_v37 = vld [vmem:[%s7988_s1 + $0x1f0] sm:$0xff]  }
  0xc9   : > { %6023 = vmatprep.mubr.bf16.mxu0 %v2967_v52  ;;  %v7501_v52 = vld [vmem:[#allocation2 + $0x58] sm:$0xff] }
  0xcf   : > { %5708 = vmatmul.mubr.bf16.gmra.mrb[24].mxu1 %v7064_v14  ;;  %v6780_v14 = vld [vmem:[%s7988_s1 + $0x1d0] sm:$0xff]  }
  0xd0   : > { %6024 = vmatmul.mubr.bf16.gmra.mrb[52].mxu0 %v2969_v5  ;;  %5711 = vmatprep.mubr.bf16.mxu1 %v7076_v27  ;;  %v7473_v27 = vld [vmem:[#allocation2 + $0x38] sm:$0xff]  ;;  %v7517_v5 = vld [vmem:[#allocation2 + $0x68] sm:$0xff] }
  0xd1   : > { %6043 = vmatprep.mubr.bf16.mxu0 %v7453_v7 }
  0xd7   : > { %5712 = vmatmul.mubr.bf16.gmra.mrb[28].mxu1 %v7078_v28  ;;  %v6782_v28 = vld [vmem:[%s7988_s1 + $0x1d8] sm:$0xff]  }
  0xd8   : > { %6044 = vmatmul.mubr.bf16.vlgmr.msra.gmra.mrb[0].mxu0 %v7458_v9  ;;  %5715 = vmatprep.mubr.bf16.mxu1 %v7093_v44  ;;  %v6784_v44 = vld [vmem:[%s7988_s1 + $0x1e0] sm:$0xff]  }
  0xd9   : > { %6100 = vmatpush3.bf16.msra.mxu0 %v7310_v48  ;;  %6047 = vmatprep.mubr.bf16.mxu0 %v7460_v26  ;;  %v7487_v48 = vld [vmem:[#allocation2 + $0x48] sm:$0xff] }
  0xda   : > { %6101 = vmatprep.subr.bf16.mxu0 %v6778_v13 }
  0xdd   : > { %6102 = vmatpush3.bf16.msra.mxu0 %v6778_v13  ;;  %v6815_v13 = vld [vmem:[#allocation2 + $0x70] sm:$0xff] }
  0xde   : > { %6103 = vmatprep.subr.bf16.mxu0 %v6780_v14 }
  0xdf   : > { %5716 = vmatmul.mubr.bf16.gmra.mrb[32].mxu1 %v7104_v57 }
  0xe0   : > { %6048 = vmatmul.mubr.bf16.gmra.mrb[4].mxu0 %v7473_v27  ;;  %5719 = vmatprep.mubr.bf16.mxu1 %v7123_v11 }
  0xe1   : > { %6051 = vmatprep.mubr.bf16.mxu0 %v7475_v46  ;;  %6104 = vmatpush3.bf16.msra.mxu0 %v6780_v14  ;;  %v1303_v14 = vld [vmem:[#allocation2] sm:$0xfe] }
  0xe2   : > { %6105 = vmatprep.subr.bf16.mxu0 %v6782_v28 }
  0xe5   : > { %6106 = vmatpush3.bf16.msra.mxu0 %v6782_v28  ;;  %v6816_v28 = vld [vmem:[#allocation2 + $0x78] sm:$0xff] }
  0xe6   : > { %6107 = vmatprep.subr.bf16.mxu0 %v6784_v44 }
  0xe7   : > { %5720 = vmatmul.mubr.bf16.gmra.mrb[36].mxu1 %v7127_v19 }
  0xe8   : > { %6052 = vmatmul.mubr.bf16.gmra.mrb[8].mxu0 %v7487_v48  ;;  %5723 = vmatprep.mubr.bf16.mxu1 %v7130_v23 }
  0xe9   : > { %6055 = vmatprep.mubr.bf16.mxu0 %v7489_v31  ;;  %6108 = vmatpush3.bf16.msra.mxu0 %v6784_v44  ;;  %v7525_v44 = vld [vmem:[#allocation2 + $0x80] sm:$0xff] }
  0xea   : > { %6109 = vmatprep.subr.bf16.mxu0 %v6786_v3 }
  0xed   : > { %6110 = vmatpush3.bf16.msra.mxu0 %v6786_v3  ;;  %v1351_v3 = vrot.slane %v1303_v14, 1 }
  0xee   : > { %6111 = vmatprep.subr.bf16.mxu0 %v6788_v37 }
  0xef   : > { %5724 = vmatmul.mubr.bf16.gmra.mrb[40].mxu1 %v7148_v43 }
  0xf0   : > { %6056 = vmatmul.mubr.bf16.gmra.mrb[12].mxu0 %v7501_v52  ;;  %5727 = vmatprep.mubr.bf16.mxu1 %v7157_v55 }
  0xf1   : > { %6059 = vmatprep.mubr.bf16.mxu0 %v7503_v59  ;;  %6112 = vmatpush3.bf16.msra.mxu0 %v6788_v37  ;;  %v1352_v37 = vrot.slane %v7365_v39, 1  ;;  %v6785_v39 = vld [vmem:[%s7988_s1 + $0xc8] sm:$0xff]  }
  0xf2   : > { %6113 = vmatprep.subr.bf16.mxu0 %v6790_v60 }
  0xf5   : > { %6114 = vmatpush3.bf16.msra.mxu0 %v6790_v60  ;;  %v1353_v60 = vsel %vm1350_vm1, %v1351_v3, %v1352_v37  ;;  %v3839_v3 = vshrl.u32 %v7473_v27, 16 }
  0xf6   : > { %6171 = vmatprep.subr.bf16.mxu0 %v7515_v0 }
  0xf7   : > { %5728 = vmatmul.mubr.bf16.gmra.mrb[44].mxu1 %v7167_v1 }
  0xf8   : > { %6060 = vmatmul.mubr.bf16.gmra.mrb[16].mxu0 %v7517_v5  ;;  %5731 = vmatprep.mubr.bf16.mxu1 %v7173_v8 }
  0xf9   : > { %6063 = vmatprep.mubr.bf16.mxu0 %v6815_v13  ;;  %v1354_v13 = vrot.slane %v7370_v54, 1  ;;  %v3835_v54 = vshll.u32 %v7473_v27, 16 }
  0xfb   : > { %v1357_v33 = vsel %vm1350_vm1, %v1354_v13, %v7193_v41  ;;  %v235_v41 = vld [vmem:[%s6935_s8 + $0x208] sm:$0xff] }
  0xff   : > { %5732 = vmatmul.mubr.bf16.gmra.mrb[48].mxu1 %v7182_v24 }
 0x100   : > { %6064 = vmatmul.mubr.bf16.gmra.mrb[20].mxu0 %v6816_v28  ;;  %5735 = vmatprep.mubr.bf16.mxu1 %v7189_v35  ;;  %v1355_v28 = vsel %vm1350_vm1, %v1352_v37, %v1354_v13 }
 0x101   : > { %6067 = vmatprep.mubr.bf16.mxu0 %v7525_v44 }
 0x107   : > { %5736 = vmatmul.mubr.bf16.gmra.mrb[52].mxu1 %v7198_v49 }
 0x108   : > { %6068 = vmatmul.mubr.bf16.gmra.mrb[24].mxu0 %v7104_v57  ;;  %5755 = vmatprep.mubr.bf16.mxu1 %v1353_v60  ;;  %v6787_v57 = vld [vmem:[%s7988_s1 + $0xd0] sm:$0xff]   ;;  %v3847_v60 = vshrl.u32 %v7475_v46, 16 }
 0x109   : > { %6071 = vmatprep.mubr.bf16.mxu0 %v7123_v11  ;;  %v6789_v11 = vld [vmem:[%s7988_s1 + $0xd8] sm:$0xff]  }
 0x10f   : > { %5756 = vmatmul.mubr.bf16.vlgmr.msra.gmra.mrb[0].mxu1 %v1355_v28 }
 0x110   : > { %6072 = vmatmul.mubr.bf16.gmra.mrb[28].mxu0 %v7127_v19  ;;  %5812 = vmatpush3.bf16.msra.mxu1 %v7429_v38  ;;  %v6791_v19 = vld [vmem:[%s7988_s1 + $0xe0] sm:$0xff]   ;;  %v3843_v38 = vshll.u32 %v7475_v46, 16 }
 0x111   : > { %5759 = vmatprep.mubr.bf16.mxu1 %v1357_v33  ;;  %6075 = vmatprep.mubr.bf16.mxu0 %v7130_v23  ;;  %v6793_v23 = vld [vmem:[%s7988_s1 + $0xe8] sm:$0xff]   ;;  %v234_v33 = vld [vmem:[%s6935_s8 + $0x200] sm:$0xff] }
 0x112   : > { %5813 = vmatprep.subr.bf16.mxu1 %v6785_v39  ;;  %v3845_v13 = vrot.slane %v3843_v38, 1 }
 0x114   : > { %5814 = vmatpush3.bf16.msra.mxu1 %v6785_v39  ;;  %v3849_v39 = vor.u32 %v3847_v60, %v3845_v13 }
 0x115   : > { %5815 = vmatprep.subr.bf16.mxu1 %v6787_v57 }
 0x117   : > { %5760 = vmatmul.mubr.bf16.gmra.mrb[4].mxu1 %v7219_v51  ;;  %v303_v51 = vmax.f32 %v235_v41, 0.0  ;;  %v6798_v41 = vld [vmem:[%s7988_s1 + $0x218] sm:$0xff]  }
 0x118   : > { %6076 = vmatmul.mubr.bf16.gmra.mrb[32].mxu0 %v7148_v43  ;;  %5763 = vmatprep.mubr.bf16.mxu1 %v7229_v18  ;;  %v302_v43 = vmax.f32 %v234_v33, 0.0  ;;  %v6795_v18 = vld [vmem:[%s7988_s1 + $0xf0] sm:$0xff]   ;;  %v3867_v33 = vshll.u32 %v7501_v52, 16 }
 0x119   : > { %6079 = vmatprep.mubr.bf16.mxu0 %v7157_v55  ;;  %5816 = vmatpush3.bf16.msra.mxu1 %v6787_v57 }
 0x11a   : > { %5817 = vmatprep.subr.bf16.mxu1 %v6789_v11  ;;  %v338_v55 = vpack.c.bf16 %v303_v51, %v302_v43 }
 0x11c   : > { %372 = vst [vmem:[#allocation2 + $0x100] sm:$0xff] %v338_v55 }
 0x11d   : > { %5818 = vmatpush3.bf16.msra.mxu1 %v6789_v11  ;;  %v6796_v11 = vld [vmem:[%s7988_s1 + $0x210] sm:$0xff]  }
 0x11e   : > { %5819 = vmatprep.subr.bf16.mxu1 %v6791_v19 }
 0x11f   : > { %5764 = vmatmul.mubr.bf16.gmra.mrb[8].mxu1 %v7254_v47  ;;  %v6797_v47 = vld [vmem:[%s7988_s1 + $0xf8] sm:$0xff]  }
 0x120   : > { %6080 = vmatmul.mubr.bf16.gmra.mrb[36].mxu0 %v7167_v1  ;;  %5767 = vmatprep.mubr.bf16.mxu1 %v7258_v50  ;;  %v7578_v1 = vld [vmem:[%s7988_s1 + $0x100] sm:$0xff]   ;;  %v3819_v50 = vshll.u32 %v7458_v9, 16 }
 0x121   : > { %6083 = vmatprep.mubr.bf16.mxu0 %v7173_v8  ;;  %5820 = vmatpush3.bf16.msra.mxu1 %v6791_v19  ;;  %v3814_v8 = vshll.u32 %v7453_v7, 16  ;;  %v3859_v19 = vshll.u32 %v7489_v31, 16 }
 0x122   : > { %5821 = vmatprep.subr.bf16.mxu1 %v6793_v23 }
 0x123   : > { %v3861_v43 = vrot.slane %v3859_v19, 1 }
 0x125   : > { %5822 = vmatpush3.bf16.msra.mxu1 %v6793_v23 }
 0x126   : > { %5823 = vmatprep.subr.bf16.mxu1 %v6795_v18 }
 0x127   : > { %5768 = vmatmul.mubr.bf16.gmra.mrb[12].mxu1 %v7272_v4  ;;  %v3821_v4 = vrot.slane %v3819_v50, 1  ;;  %v3883_v50 = vshll.u32 %v7517_v5, 16 }
 0x128   : > { %6084 = vmatmul.mubr.bf16.gmra.mrb[40].mxu0 %v7182_v24  ;;  %5771 = vmatprep.mubr.bf16.mxu1 %v7276_v6  ;;  %v3812_v24 = vshrl.u32 %v7453_v7, 16  ;;  %v3827_v6 = vshll.u32 %v7460_v26, 16 }
 0x129   : > { %6087 = vmatprep.mubr.bf16.mxu0 %v7189_v35  ;;  %5824 = vmatpush3.bf16.msra.mxu1 %v6795_v18  ;;  %v3816_v35 = vrot.slane %v3814_v8, 1  ;;  %v3869_v18 = vrot.slane %v3867_v33, 1  ;;  %v3875_v8 = vshll.u32 %v7503_v59, 16  ;;  %v7672_v33 = vld [vmem:[#allocation2 + $0x98] sm:$0xff] }
 0x12a   : > { %5825 = vmatprep.subr.bf16.mxu1 %v6797_v47 }
 0x12d   : > { %5826 = vmatpush3.bf16.msra.mxu1 %v6797_v47  ;;  %v6799_v47 = vld [vmem:[%s7988_s1 + $0x220] sm:$0xff]  }
 0x12e   : > { %6243 = vmatprep.subr.bf16.mxu1 %v7578_v1 }
 0x12f   : > { %5772 = vmatmul.mubr.bf16.gmra.mrb[16].mxu1 %v7292_v30 }
 0x130   : > { %6088 = vmatmul.mubr.bf16.gmra.mrb[44].mxu0 %v7198_v49  ;;  %5775 = vmatprep.mubr.bf16.mxu1 %v7298_v32  ;;  %v3817_v49 = vor.u32 %v3816_v35, %v3812_v24  ;;  %v3831_v32 = vshrl.u32 %v7460_v26, 16  ;;  %v3879_v35 = vshrl.u32 %v7503_v59, 16 }
 0x131   : > { %6091 = vmatprep.mubr.bf16.mxu0 %v7205_v53  ;;  %v3823_v53 = vshrl.u32 %v7458_v9, 16 }
 0x132   : > { %v3822_v30 = vsel %vm436_vm0, %v3817_v49, %v3821_v4  ;;  %v6800_v49 = vld [vmem:[%s7988_s1 + $0x228] sm:$0xff]  }
 0x137   : > { %5776 = vmatmul.mubr.bf16.gmra.mrb[20].mxu1 %v7316_v56 }
 0x138   : > { %6092 = vmatmul.mubr.bf16.gmra.mrb[48].mxu0 %v7232_v21  ;;  %5779 = vmatprep.mubr.bf16.mxu1 %v7322_v62  ;;  %v3829_v21 = vrot.slane %v3827_v6, 1  ;;  %v3837_v62 = vrot.slane %v3835_v54, 1  ;;  %v6801_v54 = vld [vmem:[%s7988_s1 + $0x230] sm:$0xff]  }
 0x139   : > { %6095 = vmatprep.mubr.bf16.mxu0 %v7234_v25  ;;  %v3825_v25 = vor.u32 %v3823_v53, %v3821_v4  ;;  %v3877_v4 = vrot.slane %v3875_v8, 1  ;;  %v7640_v53 = vld [vmem:[#allocation2 + $0x70] sm:$0xff] }
 0x13a   : > { %v3833_v56 = vor.u32 %v3831_v32, %v3829_v21  ;;  %v3841_v28 = vor.u32 %v3839_v3, %v3837_v62  ;;  %v3885_v32 = vrot.slane %v3883_v50, 1 }
 0x13b   : > { %v3830_v14 = vsel %vm436_vm0, %v3825_v25, %v3829_v21  ;;  %v7645_v21 = vld [vmem:[#allocation2 + $0x78] sm:$0xff] }
 0x13c   : > { %v3838_v37 = vsel %vm436_vm0, %v3833_v56, %v3837_v62  ;;  %v3846_v23 = vsel %vm436_vm0, %v3841_v28, %v3845_v13  ;;  %v3895_v62 = vshrl.u32 %v7640_v53, 16  ;;  %v3899_v38 = vshll.u32 %v7645_v21, 16  ;;  %v7660_v13 = vld [vmem:[#allocation2 + $0x88] sm:$0xff] }
 0x13f   : > { %5780 = vmatmul.mubr.bf16.gmra.mrb[24].mxu1 %v7335_v15  ;;  %v6794_v15 = vld [vmem:[%s7988_s1 + $0x208] sm:$0xff]  }
 0x140   : > { %6096 = vmatmul.mubr.bf16.gmra.mrb[52].mxu0 %v7441_v22  ;;  %5783 = vmatprep.mubr.bf16.mxu1 %v7339_v20  ;;  %v3851_v20 = vshll.u32 %v7487_v48, 16 }
 0x141   : > { %6115 = vmatprep.mubr.bf16.mxu0 %v3822_v30  ;;  %v3881_v30 = vor.u32 %v3879_v35, %v3877_v4  ;;  %v7685_v35 = vld [vmem:[#allocation2 + $0xa8] sm:$0xff] }
 0x142   : > { %v3853_v57 = vrot.slane %v3851_v20, 1  ;;  %v3901_v20 = vrot.slane %v3899_v38, 1 }
 0x143   : > { %v3886_v56 = vsel %vm436_vm0, %v3881_v30, %v3885_v32  ;;  %v3947_v30 = vshll.u32 %v7685_v35, 16 }
 0x147   : > { %5784 = vmatmul.mubr.bf16.gmra.mrb[28].mxu1 %v7347_v34  ;;  %v3855_v34 = vshrl.u32 %v7487_v48, 16 }
 0x148   : > { %6116 = vmatmul.mubr.bf16.vlgmr.msra.gmra.mrb[0].mxu0 %v3830_v14  ;;  %5787 = vmatprep.mubr.bf16.mxu1 %v7350_v36  ;;  %v3854_v36 = vsel %vm436_vm0, %v3849_v39, %v3853_v57  ;;  %v6802_v14 = vld [vmem:[%s7988_s1 + $0x238] sm:$0xff]  }
 0x149   : > { %6172 = vmatpush3.bf16.msra.mxu0 %v7515_v0  ;;  %6119 = vmatprep.mubr.bf16.mxu0 %v3838_v37  ;;  %v3863_v0 = vshrl.u32 %v7489_v31, 16  ;;  %v3857_v51 = vor.u32 %v3855_v34, %v3853_v57  ;;  %v7670_v34 = vld [vmem:[#allocation2 + $0x90] sm:$0xff] }
 0x14a   : > { %6173 = vmatprep.subr.bf16.mxu0 %v6794_v15 }
 0x14b   : > { %v3865_v55 = vor.u32 %v3863_v0, %v3861_v43  ;;  %v3862_v24 = vsel %vm436_vm0, %v3857_v51, %v3861_v43  ;;  %v3919_v51 = vshrl.u32 %v7660_v13, 16 }
 0x14d   : > { %6174 = vmatpush3.bf16.msra.mxu0 %v6794_v15  ;;  %v7658_v15 = vld [vmem:[#allocation2 + $0x80] sm:$0xff] }
 0x14e   : > { %6175 = vmatprep.subr.bf16.mxu0 %v6796_v11  ;;  %v3907_v28 = vshll.u32 %v7658_v15, 16  ;;  %v3911_v57 = vshrl.u32 %v7658_v15, 16 }
 0x14f   : > { %5788 = vmatmul.mubr.bf16.gmra.mrb[32].mxu1 %v7357_v45  ;;  %v3871_v45 = vshrl.u32 %v7501_v52, 16 }
 0x150   : > { %6120 = vmatmul.mubr.bf16.gmra.mrb[4].mxu0 %v3846_v23  ;;  %5791 = vmatprep.mubr.bf16.mxu1 %v7360_v29  ;;  %v3870_v29 = vsel %vm436_vm0, %v3865_v55, %v3869_v18  ;;  %v3909_v19 = vrot.slane %v3907_v28, 1  ;;  %v3927_v55 = vshrl.u32 %v7670_v34, 16 }
 0x151   : > { %6123 = vmatprep.mubr.bf16.mxu0 %v3854_v36  ;;  %6176 = vmatpush3.bf16.msra.mxu0 %v6796_v11  ;;  %v3873_v6 = vor.u32 %v3871_v45, %v3869_v18  ;;  %v3915_v11 = vshll.u32 %v7660_v13, 16  ;;  %v1406_v18 = vrot.slane %v7328_v2, 1 }
 0x152   : > { %6177 = vmatprep.subr.bf16.mxu0 %v6798_v41  ;;  %v3913_v36 = vor.u32 %v3911_v57, %v3909_v19 }
 0x153   : > { %v3878_v25 = vsel %vm436_vm0, %v3873_v6, %v3877_v4  ;;  %v3917_v0 = vrot.slane %v3915_v11, 1  ;;  %v1407_v50 = vsel %vm1350_vm1, %v7424_v61, %v1406_v18  ;;  %v1797_v4 = vld [vmem:[#allocation2 + $0x10] sm:$0xff]  ;;  %v7712_v11 = vld [vmem:[#allocation2 + $0xc8] sm:$0xff]  ;;  %v6821_v18 = vld [vmem:[%s7988_s1 + $0x118] sm:$0xff]  }
 0x154   : > { %v7695_v61 = vld [vmem:[#allocation2 + $0xb0] sm:$0xff] }
 0x155   : > { %6178 = vmatpush3.bf16.msra.mxu0 %v6798_v41  ;;  %v3923_v41 = vshll.u32 %v7670_v34, 16  ;;  %v3921_v8 = vor.u32 %v3919_v51, %v3917_v0 }
 0x156   : > { %6179 = vmatprep.subr.bf16.mxu0 %v6799_v47 }
 0x157   : > { %5792 = vmatmul.mubr.bf16.gmra.mrb[36].mxu1 %v7380_v63  ;;  %v3891_v63 = vshll.u32 %v7640_v53, 16 }
 0x158   : > { %6124 = vmatmul.mubr.bf16.gmra.mrb[8].mxu0 %v3862_v24  ;;  %5795 = vmatprep.mubr.bf16.mxu1 %v7383_v58  ;;  %v3887_v58 = vshrl.u32 %v7517_v5, 16  ;;  %v7683_v24 = vld [vmem:[#allocation2 + $0xa0] sm:$0xff] }
 0x159   : > { %6127 = vmatprep.mubr.bf16.mxu0 %v3870_v29  ;;  %6180 = vmatpush3.bf16.msra.mxu0 %v6799_v47  ;;  %v3893_v3 = vrot.slane %v3891_v63, 1  ;;  %v3925_v47 = vrot.slane %v3923_v41, 1  ;;  %v3943_v6 = vshrl.u32 %v7683_v24, 16  ;;  %v3979_v41 = vshll.u32 %v7712_v11, 16 }
 0x15a   : > { %6181 = vmatprep.subr.bf16.mxu0 %v6800_v49  ;;  %v3889_v37 = vor.u32 %v3887_v58, %v3885_v32  ;;  %v7697_v58 = vld [vmem:[#allocation2 + $0xb8] sm:$0xff] }
 0x15b   : > { %v3897_v60 = vor.u32 %v3895_v62, %v3893_v3  ;;  %v3929_v45 = vor.u32 %v3927_v55, %v3925_v47  ;;  %v3955_v62 = vshll.u32 %v7695_v61, 16 }
 0x15c   : > { %v3894_v39 = vsel %vm436_vm0, %v3889_v37, %v3893_v3  ;;  %v3959_v37 = vshrl.u32 %v7695_v61, 16 }
 0x15d   : > { %6182 = vmatpush3.bf16.msra.mxu0 %v6800_v49  ;;  %v3939_v49 = vshll.u32 %v7683_v24, 16 }
 0x15e   : > { %6183 = vmatprep.subr.bf16.mxu0 %v6801_v54 }
 0x15f   : > { %5796 = vmatmul.mubr.bf16.gmra.mrb[40].mxu1 %v7396_v12  ;;  %v3903_v12 = vshrl.u32 %v7645_v21, 16  ;;  %v3941_v32 = vrot.slane %v3939_v49, 1 }
 0x160   : > { %6128 = vmatmul.mubr.bf16.gmra.mrb[12].mxu0 %v3878_v25  ;;  %5799 = vmatprep.mubr.bf16.mxu1 %v7399_v16  ;;  %v3902_v16 = vsel %vm436_vm0, %v3897_v60, %v3901_v20  ;;  %v3949_v25 = vrot.slane %v3947_v30, 1  ;;  %v3963_v60 = vshll.u32 %v7697_v58, 16 }
 0x161   : > { %6131 = vmatprep.mubr.bf16.mxu0 %v3886_v56  ;;  %6184 = vmatpush3.bf16.msra.mxu0 %v6801_v54  ;;  %v3905_v23 = vor.u32 %v3903_v12, %v3901_v20  ;;  %v3945_v63 = vor.u32 %v3943_v6, %v3941_v32  ;;  %v1798_v56 = vld [vmem:[#allocation2 + $0x18] sm:$0xff]  ;;  %v3957_v20 = vrot.slane %v3955_v62, 1  ;;  %v6819_v12 = vld [vmem:[%s7988_s1 + $0x108] sm:$0xff]   ;;  %v7743_v6 = vld [vmem:[#allocation2 + $0xe0] sm:$0xff] }
 0x162   : > { %6185 = vmatprep.subr.bf16.mxu0 %v6802_v14  ;;  %v3965_v57 = vrot.slane %v3963_v60, 1 }
 0x163   : > { %v3910_v43 = vsel %vm436_vm0, %v3905_v23, %v3909_v19  ;;  %v3950_v3 = vsel %vm436_vm0, %v3945_v63, %v3949_v25  ;;  %v6820_v23 = vld [vmem:[%s7988_s1 + $0x110] sm:$0xff]   ;;  %v4003_v63 = vshll.u32 %v7743_v6, 16 }
 0x165   : > { %6186 = vmatpush3.bf16.msra.mxu0 %v6802_v14  ;;  %v3951_v14 = vshrl.u32 %v7685_v35, 16  ;;  %v4005_v60 = vrot.slane %v4003_v63, 1 }
 0x167   : > { %5800 = vmatmul.mubr.bf16.gmra.mrb[44].mxu1 %v7412_v40  ;;  %v3918_v40 = vsel %vm436_vm0, %v3913_v36, %v3917_v0  ;;  %v3953_v28 = vor.u32 %v3951_v14, %v3949_v25  ;;  %v7753_v14 = vld [vmem:[#allocation2 + $0xe8] sm:$0xff] }
 0x168   : > { %6132 = vmatmul.mubr.bf16.gmra.mrb[16].mxu0 %v3894_v39  ;;  %5803 = vmatprep.mubr.bf16.mxu1 %v7415_v42  ;;  %v3931_v42 = vshll.u32 %v7672_v33, 16  ;;  %v7707_v39 = vld [vmem:[#allocation2 + $0xc0] sm:$0xff] }
 0x169   : > { %6135 = vmatprep.mubr.bf16.mxu0 %v3902_v16  ;;  %v3961_v16 = vor.u32 %v3959_v37, %v3957_v20  ;;  %v3971_v19 = vshll.u32 %v7707_v39, 16  ;;  %v3975_v0 = vshrl.u32 %v7707_v39, 16  ;;  %v6825_v37 = vld [vmem:[%s7988_s1 + $0x130] sm:$0xff]  }
 0x16a   : > { %v3933_v29 = vrot.slane %v3931_v42, 1  ;;  %v3981_v42 = vrot.slane %v3979_v41, 1 }
 0x16b   : > { %v3966_v36 = vsel %vm436_vm0, %v3961_v16, %v3965_v57  ;;  %v6826_v16 = vld [vmem:[%s7988_s1 + $0x138] sm:$0xff]  }
 0x16c   : > { %v3934_v2 = vsel %vm436_vm0, %v3929_v45, %v3933_v29 }
 0x16f   : > { %5804 = vmatmul.mubr.bf16.gmra.mrb[48].mxu1 %v7434_v10  ;;  %v3926_v10 = vsel %vm436_vm0, %v3921_v8, %v3925_v47  ;;  %v7730_v47 = vld [vmem:[#allocation2 + $0xd8] sm:$0xff] }
 0x170   : > { %6136 = vmatmul.mubr.bf16.gmra.mrb[20].mxu0 %v3910_v43  ;;  %5807 = vmatprep.mubr.bf16.mxu1 %v7438_v17  ;;  %v3935_v17 = vshrl.u32 %v7672_v33, 16  ;;  %v3973_v43 = vrot.slane %v3971_v19, 1 }
 0x171   : > { %6139 = vmatprep.mubr.bf16.mxu0 %v3918_v40  ;;  %v7725_v40 = vld [vmem:[#allocation2 + $0xd0] sm:$0xff] }
 0x172   : > { %v3937_v54 = vor.u32 %v3935_v17, %v3933_v29  ;;  %v3977_v55 = vor.u32 %v3975_v0, %v3973_v43  ;;  %v3987_v8 = vshll.u32 %v7725_v40, 16  ;;  %v3983_v29 = vshrl.u32 %v7712_v11, 16 }
 0x173   : > { %v3991_v49 = vshrl.u32 %v7725_v40, 16  ;;  %v4027_v0 = vshll.u32 %v7441_v22, 16 }
 0x174   : > { %v3942_v38 = vsel %vm436_vm0, %v3937_v54, %v3941_v32  ;;  %v3989_v17 = vrot.slane %v3987_v8, 1  ;;  %v6823_v54 = vld [vmem:[%s7988_s1 + $0x128] sm:$0xff]   ;;  %v4031_v8 = vshrl.u32 %v7441_v22, 16 }
 0x176   : > { %v3993_v30 = vor.u32 %v3991_v49, %v3989_v17 }
 0x177   : > { %5808 = vmatmul.mubr.bf16.gmra.mrb[52].mxu1 %v1407_v50  ;;  %v3982_v50 = vsel %vm436_vm0, %v3977_v55, %v3981_v42  ;;  %v4029_v55 = vrot.slane %v4027_v0, 1  ;;  %v6829_v0 = vld [vmem:[#allocation2 + $0x90] sm:$0xff] }
 0x178   : > { %6140 = vmatmul.mubr.bf16.gmra.mrb[24].mxu0 %v3926_v10  ;;  %5827 = vmatprep.mubr.bf16.mxu1 %v1797_v4  ;;  %v3995_v10 = vshll.u32 %v7730_v47, 16  ;;  %v6822_v4 = vld [vmem:[%s7988_s1 + $0x120] sm:$0xff]  }
 0x179   : > { %6143 = vmatprep.mubr.bf16.mxu0 %v3934_v2  ;;  %v3985_v2 = vor.u32 %v3983_v29, %v3981_v42  ;;  %v7780_v42 = vld [vmem:[#allocation2 + $0x100] sm:$0x1]  ;;  %v4033_v49 = vor.u32 %v4031_v8, %v4029_v55  ;;  %v2381_v8 = vshrl.u32 %v6829_v0, 16 }
 0x17a   : > { %v3997_v32 = vrot.slane %v3995_v10, 1 }
 0x17b   : > { %v3990_v25 = vsel %vm436_vm0, %v3985_v2, %v3989_v17  ;;  %v4476_v17 = vrot.slane %v7458_v9, 1 }
 0x17c   : > { %v3998_v62 = vsel %vm436_vm0, %v3993_v30, %v3997_v32  ;;  %v4478_v30 = vrot.slane %v7460_v26, 1 }
 0x17f   : > { %5828 = vmatmul.mubr.bf16.vlgmr.msra.gmra.mrb[0].mxu1 %v1798_v56  ;;  %v3999_v56 = vshrl.u32 %v7730_v47, 16 }
 0x180   : > { %6144 = vmatmul.mubr.bf16.gmra.mrb[28].mxu0 %v3942_v38  ;;  %6251 = vmatpush3.bf16.msra.mxu1 %v7578_v1  ;;  %v3958_v1 = vsel %vm436_vm0, %v3953_v28, %v3957_v20  ;;  %v4007_v38 = vshrl.u32 %v7743_v6, 16 }
 0x181   : > { %5831 = vmatprep.mubr.bf16.mxu1 %v7453_v7  ;;  %6147 = vmatprep.mubr.bf16.mxu0 %v3950_v3  ;;  %v3967_v7 = vshrl.u32 %v7697_v58, 16  ;;  %v4011_v3 = vshll.u32 %v7753_v14, 16  ;;  %v4001_v20 = vor.u32 %v3999_v56, %v3997_v32  ;;  %v4480_v32 = vrot.slane %v7473_v27, 1 }
 0x182   : > { %6244 = vmatprep.subr.bf16.mxu1 %v6819_v12  ;;  %v4009_v28 = vor.u32 %v4007_v38, %v4005_v60 }
 0x183   : > { %v3969_v51 = vor.u32 %v3967_v7, %v3965_v57  ;;  %v7766_v57 = vld [vmem:[#allocation2 + $0xf0] sm:$0xff]  ;;  %v4015_v7 = vshrl.u32 %v7753_v14, 16  ;;  %v4481_v63 = vsel %vm1350_vm1, %v4478_v30, %v4480_v32 }
 0x184   : > { %6252 = vmatpush3.bf16.msra.mxu1 %v6819_v12  ;;  %v7761_v12 = vrot.slane %v4011_v3, 1  ;;  %v4019_v19 = vshll.u32 %v7766_v57, 16  ;;  %v4492_v3 = vrot.slane %v7517_v5, 1 }
 0x185   : > { %6245 = vmatprep.subr.bf16.mxu1 %v6820_v23  ;;  %v3974_v45 = vsel %vm436_vm0, %v3969_v51, %v3973_v43 }
 0x186   : > { %v4021_v41 = vrot.slane %v4019_v19, 1  ;;  %v7778_v43 = vor.u32 %v4015_v7, %v7761_v12  ;;  %v6828_v19 = vld [vmem:[#allocation2 + $0x88] sm:$0xff]  ;;  %v4502_v7 = vrot.slane %v7670_v34, 1 }
 0x187   : > { %5832 = vmatmul.mubr.bf16.gmra.mrb[4].mxu1 %v7458_v9  ;;  %v4482_v9 = vrot.slane %v7475_v46, 1 }
 0x188   : > { %6148 = vmatmul.mubr.bf16.gmra.mrb[32].mxu0 %v3958_v1  ;;  %5835 = vmatprep.mubr.bf16.mxu1 %v7460_v26  ;;  %v4006_v1 = vsel %vm436_vm0, %v4001_v20, %v4005_v60  ;;  %v4496_v60 = vrot.slane %v7645_v21, 1 }
 0x189   : > { %6151 = vmatprep.mubr.bf16.mxu0 %v3966_v36  ;;  %6253 = vmatpush3.bf16.msra.mxu1 %v6820_v23  ;;  %v4014_v23 = vsel %vm436_vm0, %v4009_v28, %v7761_v12  ;;  %v4023_v36 = vshrl.u32 %v7766_v57, 16  ;;  %v4483_v56 = vsel %vm1350_vm1, %v4480_v32, %v4482_v9  ;;  %v4500_v28 = vrot.slane %v7660_v13, 1 }
 0x18a   : > { %6246 = vmatprep.subr.bf16.mxu1 %v6821_v18 }
 0x18b   : > { %v4025_v51 = vor.u32 %v4023_v36, %v4021_v41 }
 0x18d   : > { %6254 = vmatpush3.bf16.msra.mxu1 %v6821_v18  ;;  %v4022_v18 = vsel %vm436_vm0, %v7778_v43, %v4021_v41  ;;  %v4030_v29 = vsel %vm436_vm0, %v4025_v51, %v4029_v55  ;;  %v2377_v41 = vshll.u32 %v6829_v0, 16  ;;  %v2373_v51 = vshrl.u32 %v6828_v19, 16 }
 0x18e   : > { %6247 = vmatprep.subr.bf16.mxu1 %v6822_v4  ;;  %v4503_v55 = vsel %vm1350_vm1, %v4500_v28, %v4502_v7 }
 0x18f   : > { %5836 = vmatmul.mubr.bf16.gmra.mrb[8].mxu1 %v7473_v27  ;;  %v4486_v27 = vrot.slane %v7489_v31, 1 }
 0x190   : > { %6152 = vmatmul.mubr.bf16.gmra.mrb[36].mxu0 %v3974_v45  ;;  %5839 = vmatprep.mubr.bf16.mxu1 %v7475_v46  ;;  %v4035_v45 = vshll.u32 %v7780_v42, 16 }
 0x191   : > { %6155 = vmatprep.mubr.bf16.mxu0 %v3982_v50  ;;  %6255 = vmatpush3.bf16.msra.mxu1 %v6822_v4  ;;  %v4428_v50 = vld [vmem:[#allocation2 + $0x20] sm:$0xfe] }
 0x192   : > { %6248 = vmatprep.subr.bf16.mxu1 %v6823_v54  ;;  %v4037_v10 = vrot.slane %v4035_v45, 1  ;;  %v4475_v4 = vrot.slane %v4428_v50, 1  ;;  %v6830_v45 = vld [vmem:[#allocation2 + $0x98] sm:$0xff] }
 0x193   : > { %v2389_v32 = vshrl.u32 %v6830_v45, 16 }
 0x194   : > { %v4038_v2 = vsel %vm436_vm0, %v4033_v49, %v4037_v10  ;;  %v4477_v22 = vsel %vm1350_vm1, %v4475_v4, %v4476_v17 }
 0x195   : > { %6256 = vmatpush3.bf16.msra.mxu1 %v6823_v54  ;;  %v4479_v54 = vsel %vm1350_vm1, %v4476_v17, %v4478_v30  ;;  %v4508_v17 = vrot.slane %v7685_v35, 1 }
 0x196   : > { %6249 = vmatprep.subr.bf16.mxu1 %v6825_v37 }
 0x197   : > { %5840 = vmatmul.mubr.bf16.gmra.mrb[12].mxu1 %v7487_v48 }
 0x198   : > { %6156 = vmatmul.mubr.bf16.gmra.mrb[40].mxu0 %v3990_v25  ;;  %5843 = vmatprep.mubr.bf16.mxu1 %v7489_v31  ;;  %v4484_v25 = vrot.slane %v7487_v48, 1  ;;  %v4490_v48 = vrot.slane %v7503_v59, 1 }
 0x199   : > { %6159 = vmatprep.mubr.bf16.mxu0 %v3998_v62  ;;  %6257 = vmatpush3.bf16.msra.mxu1 %v6825_v37  ;;  %v4488_v62 = vrot.slane %v7501_v52, 1 }
 0x19a   : > { %6250 = vmatprep.subr.bf16.mxu1 %v6826_v16  ;;  %v4485_v26 = vsel %vm1350_vm1, %v4482_v9, %v4484_v25  ;;  %v4487_v38 = vsel %vm1350_vm1, %v4484_v25, %v4486_v27  ;;  %v4493_v31 = vsel %vm1350_vm1, %v4490_v48, %v4492_v3  ;;  %v6832_v25 = vld [vmem:[#allocation2 + $0xa8] sm:$0xff] }
 0x19b   : > { %v4489_v46 = vsel %vm1350_vm1, %v4486_v27, %v4488_v62  ;;  %v4491_v37 = vsel %vm1350_vm1, %v4488_v62, %v4490_v48  ;;  %v6833_v48 = vld [vmem:[#allocation2 + $0xb0] sm:$0xff] }
 0x19d   : > { %6258 = vmatpush3.bf16.msra.mxu1 %v6826_v16 }
 0x19f   : > { %5844 = vmatmul.mubr.bf16.gmra.mrb[16].mxu1 %v7501_v52  ;;  %v4494_v52 = vrot.slane %v7640_v53, 1 }
 0x1a0   : > { %6160 = vmatmul.mubr.bf16.gmra.mrb[44].mxu0 %v4006_v1  ;;  %5847 = vmatprep.mubr.bf16.mxu1 %v7503_v59 }
 0x1a1   : > { %6163 = vmatprep.mubr.bf16.mxu0 %v4014_v23  ;;  %v4495_v20 = vsel %vm1350_vm1, %v4492_v3, %v4494_v52  ;;  %v4497_v59 = vsel %vm1350_vm1, %v4494_v52, %v4496_v60  ;;  %v7992_v23 = vld [vmem:[#allocation3_spill] sm:$0xff]  ;;  %v2409_v3 = vshll.u32 %v6833_v48, 16 }
 0x1a7   : > { %5848 = vmatmul.mubr.bf16.gmra.mrb[20].mxu1 %v7517_v5  ;;  %v4498_v5 = vrot.slane %v7658_v15, 1 }
 0x1a8   : > { %6164 = vmatmul.mubr.bf16.gmra.mrb[48].mxu0 %v4022_v18  ;;  %5851 = vmatprep.mubr.bf16.mxu1 %v7640_v53  ;;  %v2365_v53 = vshrl.u32 %v7525_v44, 16  ;;  %v1824_v44 = vld [vmem:[#allocation2 + $0xe8] sm:$0xff] }
 0x1a9   : > { %6167 = vmatprep.mubr.bf16.mxu0 %v4030_v29  ;;  %v4499_v16 = vsel %vm1350_vm1, %v4496_v60, %v4498_v5  ;;  %v4501_v1 = vsel %vm1350_vm1, %v4498_v5, %v4500_v28  ;;  %v2385_v29 = vshll.u32 %v6830_v45, 16  ;;  %v4520_v45 = vrot.slane %v7730_v47, 1 }
 0x1ab   : > { %v2387_v4 = vrot.slane %v2385_v29, 1  ;;  %v6837_v29 = vld [vmem:[#allocation2 + $0xd0] sm:$0xff] }
 0x1ad   : > { %v2391_v27 = vor.u32 %v2389_v32, %v2387_v4 }
 0x1af   : > { %5852 = vmatmul.mubr.bf16.gmra.mrb[24].mxu1 %v7645_v21  ;;  %v2369_v21 = vshll.u32 %v6828_v19, 16 }
 0x1b0   : > { %6168 = vmatmul.mubr.bf16.gmra.mrb[52].mxu0 %v4038_v2  ;;  %5855 = vmatprep.mubr.bf16.mxu1 %v7658_v15  ;;  %v2367_v15 = vor.u32 %v2365_v53, %v7992_v23  ;;  %v6831_v2 = vld [vmem:[#allocation2 + $0xa0] sm:$0xff] }
 0x1b1   : > { %6187 = vmatprep.mubr.bf16.mxu0 %v4477_v22  ;;  %v2371_v36 = vrot.slane %v2369_v21, 1  ;;  %v2393_v22 = vshll.u32 %v6831_v2, 16  ;;  %v2397_v9 = vshrl.u32 %v6831_v2, 16  ;;  %v4516_v21 = vrot.slane %v7712_v11, 1 }
 0x1b3   : > { %v2372_v18 = vsel %vm436_vm0, %v2367_v15, %v2371_v36  ;;  %v2375_v49 = vor.u32 %v2373_v51, %v2371_v36 }
 0x1b7   : > { %5856 = vmatmul.mubr.bf16.gmra.mrb[28].mxu1 %v7660_v13  ;;  %v4504_v13 = vrot.slane %v7672_v33, 1 }
 0x1b8   : > { %6188 = vmatmul.mubr.bf16.vlgmr.msra.gmra.mrb[0].mxu0 %v4479_v54  ;;  %5859 = vmatprep.mubr.bf16.mxu1 %v7670_v34  ;;  %v2379_v34 = vrot.slane %v2377_v41, 1  ;;  %v6836_v41 = vld [vmem:[#allocation2 + $0xc8] sm:$0xff] }
 0x1b9   : > { %6191 = vmatprep.mubr.bf16.mxu0 %v4481_v63  ;;  %v4505_v50 = vsel %vm1350_vm1, %v4502_v7, %v4504_v13 }
 0x1ba   : > { %v2383_v10 = vor.u32 %v2381_v8, %v2379_v34  ;;  %v2380_v30 = vsel %vm436_vm0, %v2375_v49, %v2379_v34  ;;  %v2437_v49 = vshrl.u32 %v6836_v41, 16 }
 0x1bc   : > { %v2388_v63 = vsel %vm436_vm0, %v2383_v10, %v2387_v4  ;;  %v2445_v4 = vshrl.u32 %v6837_v29, 16 }
 0x1bf   : > { %5860 = vmatmul.mubr.bf16.gmra.mrb[32].mxu1 %v7672_v33  ;;  %v4506_v33 = vrot.slane %v7683_v24, 1 }
 0x1c0   : > { %6192 = vmatmul.mubr.bf16.gmra.mrb[4].mxu0 %v4483_v56  ;;  %5863 = vmatprep.mubr.bf16.mxu1 %v7683_v24  ;;  %v2401_v56 = vshll.u32 %v6832_v25, 16  ;;  %v2395_v24 = vrot.slane %v2393_v22, 1 }
 0x1c1   : > { %6195 = vmatprep.mubr.bf16.mxu0 %v4485_v26  ;;  %v4507_v54 = vsel %vm1350_vm1, %v4504_v13, %v4506_v33  ;;  %v4509_v26 = vsel %vm1350_vm1, %v4506_v33, %v4508_v17 }
 0x1c2   : > { %v2399_v62 = vor.u32 %v2397_v9, %v2395_v24  ;;  %v6839_v9 = vld [vmem:[#allocation2 + $0xe0] sm:$0xff] }
 0x1c7   : > { %5864 = vmatmul.mubr.bf16.gmra.mrb[36].mxu1 %v7685_v35  ;;  %v4510_v35 = vrot.slane %v7695_v61, 1 }
 0x1c8   : > { %6196 = vmatmul.mubr.bf16.gmra.mrb[8].mxu0 %v4487_v38  ;;  %5867 = vmatprep.mubr.bf16.mxu1 %v7695_v61  ;;  %v2403_v38 = vrot.slane %v2401_v56, 1  ;;  %v2411_v61 = vrot.slane %v2409_v3, 1 }
 0x1c9   : > { %6199 = vmatprep.mubr.bf16.mxu0 %v4489_v46  ;;  %v4512_v46 = vrot.slane %v7697_v58, 1  ;;  %v4511_v52 = vsel %vm1350_vm1, %v4508_v17, %v4510_v35  ;;  %v6838_v17 = vld [vmem:[#allocation2 + $0xd8] sm:$0xff] }
 0x1ca   : > { %v2404_v60 = vsel %vm436_vm0, %v2399_v62, %v2403_v38  ;;  %v2449_v2 = vshll.u32 %v6838_v17, 16 }
 0x1cb   : > { %v4513_v28 = vsel %vm1350_vm1, %v4510_v35, %v4512_v46  ;;  %v2461_v35 = vshrl.u32 %v6839_v9, 16 }
 0x1cf   : > { %5868 = vmatmul.mubr.bf16.gmra.mrb[40].mxu1 %v7697_v58  ;;  %v4514_v58 = vrot.slane %v7707_v39, 1 }
 0x1d0   : > { %6200 = vmatmul.mubr.bf16.gmra.mrb[12].mxu0 %v4491_v37  ;;  %5871 = vmatprep.mubr.bf16.mxu1 %v7707_v39  ;;  %v2396_v37 = vsel %vm436_vm0, %v2391_v27, %v2395_v24 }
 0x1d1   : > { %6203 = vmatprep.mubr.bf16.mxu0 %v4493_v31  ;;  %v2405_v31 = vshrl.u32 %v6832_v25, 16  ;;  %v4515_v36 = vsel %vm1350_vm1, %v4512_v46, %v4514_v58  ;;  %v4517_v51 = vsel %vm1350_vm1, %v4514_v58, %v4516_v21  ;;  %v2457_v25 = vshll.u32 %v6839_v9, 16 }
 0x1d7   : > { %5872 = vmatmul.mubr.bf16.gmra.mrb[44].mxu1 %v7712_v11  ;;  %v4518_v11 = vrot.slane %v7725_v40, 1 }
 0x1d8   : > { %6204 = vmatmul.mubr.bf16.gmra.mrb[16].mxu0 %v4495_v20  ;;  %5875 = vmatprep.mubr.bf16.mxu1 %v7725_v40  ;;  %v2413_v20 = vshrl.u32 %v6833_v48, 16  ;;  %v6840_v48 = vld [vmem:[#allocation2 + $0xf8] sm:$0xff] }
 0x1d9   : > { %6207 = vmatprep.mubr.bf16.mxu0 %v4497_v59  ;;  %v6834_v59 = vld [vmem:[#allocation2 + $0xb8] sm:$0xff]  ;;  %v4519_v33 = vsel %vm1350_vm1, %v4516_v21, %v4518_v11  ;;  %v4521_v22 = vsel %vm1350_vm1, %v4518_v11, %v4520_v45  ;;  %v4528_v3 = vrot.slane %v6840_v48, 1 }
 0x1da   : > { %v2417_v5 = vshll.u32 %v6834_v59, 16  ;;  %v2415_v53 = vor.u32 %v2413_v20, %v2411_v61  ;;  %v2421_v15 = vshrl.u32 %v6834_v59, 16 }
 0x1dc   : > { %v2419_v19 = vrot.slane %v2417_v5, 1 }
 0x1de   : > { %v2420_v13 = vsel %vm436_vm0, %v2415_v53, %v2419_v19 }
 0x1df   : > { %5876 = vmatmul.mubr.bf16.gmra.mrb[48].mxu1 %v7730_v47  ;;  %v4522_v47 = vrot.slane %v7743_v6, 1 }
 0x1e0   : > { %6208 = vmatmul.mubr.bf16.gmra.mrb[20].mxu0 %v4499_v16  ;;  %5879 = vmatprep.mubr.bf16.mxu1 %v7743_v6  ;;  %v2407_v16 = vor.u32 %v2405_v31, %v2403_v38  ;;  %v2459_v38 = vrot.slane %v2457_v25, 1  ;;  %v6841_v31 = vld [vmem:[#allocation2 + $0xf0] sm:$0x1] }
 0x1e1   : > { %6211 = vmatprep.mubr.bf16.mxu0 %v4501_v1  ;;  %v6835_v1 = vld [vmem:[#allocation2 + $0xc0] sm:$0xff]  ;;  %v4523_v24 = vsel %vm1350_vm1, %v4520_v45, %v4522_v47 }
 0x1e2   : > { %v2425_v7 = vshll.u32 %v6835_v1, 16  ;;  %v2412_v23 = vsel %vm436_vm0, %v2407_v16, %v2411_v61  ;;  %v2429_v0 = vshrl.u32 %v6835_v1, 16  ;;  %v2463_v46 = vor.u32 %v2461_v35, %v2459_v38 }
 0x1e4   : > { %v2427_v39 = vrot.slane %v2425_v7, 1  ;;  %v2468_v20 = vsel %vm436_vm0, %v2463_v46, %v7761_v12 }
 0x1e7   : > { %5880 = vmatmul.mubr.bf16.gmra.mrb[52].mxu1 %v1824_v44  ;;  %v2433_v44 = vshll.u32 %v6836_v41, 16 }
 0x1e8   : > { %6212 = vmatmul.mubr.bf16.gmra.mrb[24].mxu0 %v4503_v55  ;;  %5927 = vmatprep.mubr.bf16.mxu1 %v2372_v18  ;;  %v2423_v55 = vor.u32 %v2421_v15, %v2419_v19  ;;  %v2431_v18 = vor.u32 %v2429_v0, %v2427_v39 }
 0x1e9   : > { %6215 = vmatprep.mubr.bf16.mxu0 %v4505_v50  ;;  %v2435_v8 = vrot.slane %v2433_v44, 1  ;;  %v2441_v50 = vshll.u32 %v6837_v29, 16 }
 0x1ea   : > { %v2428_v34 = vsel %vm436_vm0, %v2423_v55, %v2427_v39 }
 0x1eb   : > { %v2436_v10 = vsel %vm436_vm0, %v2431_v18, %v2435_v8  ;;  %v2443_v40 = vrot.slane %v2441_v50, 1 }
 0x1ed   : > { %v2447_v32 = vor.u32 %v2445_v4, %v2443_v40 }
 0x1ef   : > { %5928 = vmatmul.mubr.bf16.vlgmr.msra.gmra.mrb[28].mxu1 %v2380_v30  ;;  %v2439_v30 = vor.u32 %v2437_v49, %v2435_v8 }
 0x1f0   : > { %6216 = vmatmul.mubr.bf16.gmra.mrb[28].mxu0 %v4507_v54  ;;  %5931 = vmatprep.mubr.bf16.mxu1 %v2388_v63  ;;  %v2451_v54 = vrot.slane %v2449_v2, 1  ;;  %v4524_v63 = vrot.slane %v7753_v14, 1  ;;  %v4526_v14 = vrot.slane %v7766_v57, 1  ;;  %v4530_v57 = vrot.slane %v7780_v42, 1 }
 0x1f1   : > { %6219 = vmatprep.mubr.bf16.mxu0 %v4509_v26  ;;  %v2444_v56 = vsel %vm436_vm0, %v2439_v30, %v2443_v40  ;;  %v2453_v26 = vshrl.u32 %v6838_v17, 16 }
 0x1f2   : > { %v2452_v27 = vsel %vm436_vm0, %v2447_v32, %v2451_v54  ;;  %v4525_v62 = vsel %vm1350_vm1, %v4522_v47, %v4524_v63  ;;  %v4529_v59 = vsel %vm1350_vm1, %v4526_v14, %v4528_v3  ;;  %v4531_v61 = vsel %vm1350_vm1, %v4528_v3, %v4530_v57 }
 0x1f3   : > { %v2455_v6 = vor.u32 %v2453_v26, %v2451_v54 }
 0x1f7   : > { %5932 = vmatmul.mubr.bf16.gmra.mrb[32].mxu1 %v2396_v37  ;;  %v2460_v37 = vsel %vm436_vm0, %v2455_v6, %v2459_v38 }
 0x1f8   : > { %6220 = vmatmul.mubr.bf16.gmra.mrb[32].mxu0 %v4511_v52  ;;  %5935 = vmatprep.mubr.bf16.mxu1 %v2404_v60  ;;  %v2473_v52 = vshll.u32 %v6841_v31, 16  ;;  %v4527_v60 = vsel %vm1350_vm1, %v4524_v63, %v4526_v14 }
 0x1f9   : > { %6223 = vmatprep.mubr.bf16.mxu0 %v4513_v28 }
 0x1fa   : > { %v2475_v5 = vrot.slane %v2473_v52, 1 }
 0x1fc   : > { %v2476_v28 = vsel %vm436_vm0, %v7778_v43, %v2475_v5 }
 0x1ff   : > { %5936 = vmatmul.mubr.bf16.gmra.mrb[36].mxu1 %v2412_v23 }
 0x200   : > { %6224 = vmatmul.mubr.bf16.gmra.mrb[36].mxu0 %v4515_v36  ;;  %5939 = vmatprep.mubr.bf16.mxu1 %v2420_v13 }
 0x201   : > { %6227 = vmatprep.mubr.bf16.mxu0 %v4517_v51 }
 0x207   : > { %5940 = vmatmul.mubr.bf16.gmra.mrb[40].mxu1 %v2428_v34 }
 0x208   : > { %6228 = vmatmul.mubr.bf16.gmra.mrb[40].mxu0 %v4519_v33  ;;  %5943 = vmatprep.mubr.bf16.mxu1 %v2436_v10 }
 0x209   : > { %6231 = vmatprep.mubr.bf16.mxu0 %v4521_v22 }
 0x20f   : > { %5944 = vmatmul.mubr.bf16.gmra.mrb[44].mxu1 %v2444_v56 }
 0x210   : > { %6232 = vmatmul.mubr.bf16.gmra.mrb[44].mxu0 %v4523_v24  ;;  %5947 = vmatprep.mubr.bf16.mxu1 %v2452_v27 }
 0x211   : > { %6235 = vmatprep.mubr.bf16.mxu0 %v4525_v62 }
 0x217   : > { %5948 = vmatmul.mubr.bf16.gmra.mrb[48].mxu1 %v2460_v37 }
 0x218   : > { %6236 = vmatmul.mubr.bf16.gmra.mrb[48].mxu0 %v4527_v60  ;;  %5951 = vmatprep.mubr.bf16.mxu1 %v2468_v20 }
 0x219   : > { %6239 = vmatprep.mubr.bf16.mxu0 %v4529_v59 }
 0x21f   : > { %5952 = vmatmul.mubr.bf16.gmra.mrb[52].mxu1 %v2476_v28 }
 0x220   : > { %6240 = vmatmul.mubr.bf16.gmra.mrb[52].mxu0 %v4531_v61 }
 0x252   : > { %v5829_v16 = vpop.f32.mrb[0].mxu1 }
 0x253   : > { %v1924_v58 = vpop.f32.mrb[1].mxu1 }
 0x254   : > { %v5830_v53 = vpop.f32.mrb[2].mxu1 }
 0x255   : > { %v1927_v12 = vpop.f32.mrb[3].mxu1 }
 0x25a   : > { %v5833_v19 = vpop.f32.mrb[4].mxu1 }
 0x25b   : > { %v1940_v21 = vpop.f32.mrb[5].mxu1 }
 0x25c   : > { %v5834_v1 = vpop.f32.mrb[6].mxu1 }
 0x25d   : > { %v1943_v7 = vpop.f32.mrb[7].mxu1 }
 0x262   : > { %v5837_v23 = vpop.f32.mrb[8].mxu1 }
 0x263   : > { %v1956_v15 = vpop.f32.mrb[9].mxu1 }
 0x264   : > { %v5838_v36 = vpop.f32.mrb[10].mxu1 }
 0x265   : > { %v1959_v42 = vpop.f32.mrb[11].mxu1 }
 0x26a   : > { %v5841_v13 = vpop.f32.mrb[12].mxu1 }
 0x26b   : > { %v1972_v0 = vpop.f32.mrb[13].mxu1 }
 0x26c   : > { %v5842_v43 = vpop.f32.mrb[14].mxu1 }
 0x26d   : > { %v7877_v41 = vpop.f32.mrb[15].mxu1 }
 0x272   : > { %v7879_v44 = vpop.f32.mrb[16].mxu1 }
 0x273   : > { %v7881_v51 = vpop.f32.mrb[17].mxu1 }
 0x274   : > { %v7883_v39 = vpop.f32.mrb[18].mxu1 }
 0x275   : > { %v7885_v55 = vpop.f32.mrb[19].mxu1 }
 0x27a   : > { %v7887_v11 = vpop.f32.mrb[20].mxu1 }
 0x27b   : > { %v7889_v18 = vpop.f32.mrb[21].mxu1 }
 0x27c   : > { %v7891_v8 = vpop.f32.mrb[22].mxu1 }
 0x27d   : > { %v7894_v45 = vpop.f32.mrb[23].mxu1 }
 0x282   : > { %v7896_v29 = vpop.f32.mrb[24].mxu1 }
 0x283   : > { %v7898_v50 = vpop.f32.mrb[25].mxu1 }
 0x284   : > { %v7900_v34 = vpop.f32.mrb[26].mxu1 }
 0x285   : > { %v7902_v49 = vpop.f32.mrb[27].mxu1 }
 0x28b   : > { %v6189_v33 = vpop.f32.mrb[0].mxu0 }
 0x28c   : > { %v6259_v10 = vadd.f32 %v6189_v33, %v5829_v16  ;;  %v4642_v4 = vpop.f32.mrb[1].mxu0 }
 0x28d   : > { %v6260_v17 = vadd.f32 %v4642_v4, %v1924_v58  ;;  %v6190_v2 = vpop.f32.mrb[2].mxu0 }
 0x28e   : > { %4923 = vst [vmem:[%s7907_s17 + $0x10] sm:$0xff] %v6259_v10  ;;  %v6261_v22 = vadd.f32 %v6190_v2, %v5830_v53  ;;  %v4645_v40 = vpop.f32.mrb[3].mxu0 }
 0x28f   : > { %4921 = vst [vmem:[%s7907_s17] sm:$0xff] %v6260_v17  ;;  %v6262_v30 = vadd.f32 %v4645_v40, %v1927_v12 }
 0x290   : > { %4924 = vst [vmem:[%s7907_s17 + $0x18] sm:$0xff] %v6261_v22 }
 0x291   : > { %4922 = vst [vmem:[%s7907_s17 + $0x8] sm:$0xff] %v6262_v30 }
 0x293   : > { %v6193_v47 = vpop.f32.mrb[4].mxu0 }
 0x294   : > { %v6263_v32 = vadd.f32 %v6193_v47, %v5833_v19  ;;  %v4658_v54 = vpop.f32.mrb[5].mxu0 }
 0x295   : > { %v6264_v63 = vadd.f32 %v4658_v54, %v1940_v21  ;;  %v6194_v9 = vpop.f32.mrb[6].mxu0 }
 0x296   : > { %4927 = vst [vmem:[%s7907_s17 + $0x30] sm:$0xff] %v6263_v32  ;;  %v6265_v25 = vadd.f32 %v6194_v9, %v5834_v1  ;;  %v4661_v56 = vpop.f32.mrb[7].mxu0 }
 0x297   : > { %4925 = vst [vmem:[%s7907_s17 + $0x20] sm:$0xff] %v6264_v63  ;;  %v6266_v26 = vadd.f32 %v4661_v56, %v1943_v7 }
 0x298   : > { %4928 = vst [vmem:[%s7907_s17 + $0x38] sm:$0xff] %v6265_v25 }
 0x299   : > { %4926 = vst [vmem:[%s7907_s17 + $0x28] sm:$0xff] %v6266_v26 }
 0x29b   : > { %v6197_v24 = vpop.f32.mrb[8].mxu0 }
 0x29c   : > { %v6267_v27 = vadd.f32 %v6197_v24, %v5837_v23  ;;  %v4674_v35 = vpop.f32.mrb[9].mxu0 }
 0x29d   : > { %v6268_v62 = vadd.f32 %v4674_v35, %v1956_v15  ;;  %v6198_v38 = vpop.f32.mrb[10].mxu0 }
 0x29e   : > { %4931 = vst [vmem:[%s7907_s17 + $0x50] sm:$0xff] %v6267_v27  ;;  %v6269_v6 = vadd.f32 %v6198_v38, %v5838_v36  ;;  %v4677_v14 = vpop.f32.mrb[11].mxu0 }
 0x29f   : > { %4929 = vst [vmem:[%s7907_s17 + $0x40] sm:$0xff] %v6268_v62  ;;  %v6270_v46 = vadd.f32 %v4677_v14, %v1959_v42 }
 0x2a0   : > { %4932 = vst [vmem:[%s7907_s17 + $0x58] sm:$0xff] %v6269_v6 }
 0x2a1   : > { %4930 = vst [vmem:[%s7907_s17 + $0x48] sm:$0xff] %v6270_v46 }
 0x2a3   : > { %v6201_v48 = vpop.f32.mrb[12].mxu0 }
 0x2a4   : > { %v6271_v3 = vadd.f32 %v6201_v48, %v5841_v13  ;;  %v4690_v37 = vpop.f32.mrb[13].mxu0 }
 0x2a5   : > { %v6272_v31 = vadd.f32 %v4690_v37, %v1972_v0  ;;  %v6202_v52 = vpop.f32.mrb[14].mxu0 }
 0x2a6   : > { %4935 = vst [vmem:[%s7907_s17 + $0x70] sm:$0xff] %v6271_v3  ;;  %v6273_v60 = vadd.f32 %v6202_v52, %v5842_v43  ;;  %v4693_v20 = vpop.f32.mrb[15].mxu0 }
 0x2a7   : > { %4933 = vst [vmem:[%s7907_s17 + $0x60] sm:$0xff] %v6272_v31  ;;  %v6274_v59 = vadd.f32 %v4693_v20, %v7877_v41 }
 0x2a8   : > { %4936 = vst [vmem:[%s7907_s17 + $0x78] sm:$0xff] %v6273_v60 }
 0x2a9   : > { %4934 = vst [vmem:[%s7907_s17 + $0x68] sm:$0xff] %v6274_v59 }
 0x2ab   : > { %v6205_v5 = vpop.f32.mrb[16].mxu0 }
 0x2ac   : > { %v6275_v57 = vadd.f32 %v6205_v5, %v7879_v44  ;;  %v4706_v28 = vpop.f32.mrb[17].mxu0 }
 0x2ad   : > { %v6276_v61 = vadd.f32 %v4706_v28, %v7881_v51  ;;  %v6206_v16 = vpop.f32.mrb[18].mxu0 }
 0x2ae   : > { %4939 = vst [vmem:[%s7907_s17 + $0x90] sm:$0xff] %v6275_v57  ;;  %v6277_v58 = vadd.f32 %v6206_v16, %v7883_v39  ;;  %v4709_v53 = vpop.f32.mrb[19].mxu0 }
 0x2af   : > { %4937 = vst [vmem:[%s7907_s17 + $0x80] sm:$0xff] %v6276_v61  ;;  %v6278_v12 = vadd.f32 %v4709_v53, %v7885_v55 }
 0x2b0   : > { %4940 = vst [vmem:[%s7907_s17 + $0x98] sm:$0xff] %v6277_v58 }
 0x2b1   : > { %4938 = vst [vmem:[%s7907_s17 + $0x88] sm:$0xff] %v6278_v12 }
 0x2b3   : > { %v6209_v19 = vpop.f32.mrb[20].mxu0 }
 0x2b4   : > { %v6279_v21 = vadd.f32 %v6209_v19, %v7887_v11  ;;  %v4722_v1 = vpop.f32.mrb[21].mxu0 }
 0x2b5   : > { %v6280_v7 = vadd.f32 %v4722_v1, %v7889_v18  ;;  %v6210_v23 = vpop.f32.mrb[22].mxu0 }
 0x2b6   : > { %4943 = vst [vmem:[%s7907_s17 + $0xb0] sm:$0xff] %v6279_v21  ;;  %v6281_v15 = vadd.f32 %v6210_v23, %v7891_v8  ;;  %v4725_v36 = vpop.f32.mrb[23].mxu0 }
 0x2b7   : > { %4941 = vst [vmem:[%s7907_s17 + $0xa0] sm:$0xff] %v6280_v7  ;;  %v6282_v42 = vadd.f32 %v4725_v36, %v7894_v45 }
 0x2b8   : > { %4944 = vst [vmem:[%s7907_s17 + $0xb8] sm:$0xff] %v6281_v15 }
 0x2b9   : > { %4942 = vst [vmem:[%s7907_s17 + $0xa8] sm:$0xff] %v6282_v42 }
 0x2bb   : > { %v6213_v13 = vpop.f32.mrb[24].mxu0 }
 0x2bc   : > { %v6283_v0 = vadd.f32 %v6213_v13, %v7896_v29  ;;  %v4738_v43 = vpop.f32.mrb[25].mxu0 }
 0x2bd   : > { %v6284_v41 = vadd.f32 %v4738_v43, %v7898_v50  ;;  %v6214_v44 = vpop.f32.mrb[26].mxu0 }
 0x2be   : > { %4947 = vst [vmem:[%s7907_s17 + $0xd0] sm:$0xff] %v6283_v0  ;;  %v6285_v51 = vadd.f32 %v6214_v44, %v7900_v34  ;;  %v4741_v39 = vpop.f32.mrb[27].mxu0 }
 0x2bf   : > { %4945 = vst [vmem:[%s7907_s17 + $0xc0] sm:$0xff] %v6284_v41  ;;  %v6286_v55 = vadd.f32 %v4741_v39, %v7902_v49 }
 0x2c0   : > { %4948 = vst [vmem:[%s7907_s17 + $0xd8] sm:$0xff] %v6285_v51 }
 0x2c1   : > { %4946 = vst [vmem:[%s7907_s17 + $0xc8] sm:$0xff] %v6286_v55 }
 0x2c2   : > { %v5929_v11 = vpop.f32.mrb[28].mxu1 }
 0x2c3   : > { %v6217_v18 = vpop.f32.mrb[28].mxu0  ;;  %v2699_v8 = vpop.f32.mrb[29].mxu1 }
 0x2c4   : > { %v6287_v45 = vadd.f32 %v6217_v18, %v5929_v11  ;;  %v4754_v29 = vpop.f32.mrb[29].mxu0  ;;  %v5930_v50 = vpop.f32.mrb[30].mxu1 }
 0x2c5   : > { %v6288_v33 = vadd.f32 %v4754_v29, %v2699_v8  ;;  %v6218_v10 = vpop.f32.mrb[30].mxu0  ;;  %v2702_v4 = vpop.f32.mrb[31].mxu1 }
 0x2c6   : > { %4951 = vst [vmem:[%s7907_s17 + $0xf0] sm:$0xff] %v6287_v45  ;;  %v6289_v34 = vadd.f32 %v6218_v10, %v5930_v50  ;;  %v4757_v17 = vpop.f32.mrb[31].mxu0 }
 0x2c7   : > { %4949 = vst [vmem:[%s7907_s17 + $0xe0] sm:$0xff] %v6288_v33  ;;  %v6290_v49 = vadd.f32 %v4757_v17, %v2702_v4 }
 0x2c8   : > { %4952 = vst [vmem:[%s7907_s17 + $0xf8] sm:$0xff] %v6289_v34 }
 0x2c9   : > { %4950 = vst [vmem:[%s7907_s17 + $0xe8] sm:$0xff] %v6290_v49 }
 0x2ca   : > { %v5933_v2 = vpop.f32.mrb[32].mxu1 }
 0x2cb   : > { %v6221_v22 = vpop.f32.mrb[32].mxu0  ;;  %v2715_v40 = vpop.f32.mrb[33].mxu1 }
 0x2cc   : > { %v6291_v30 = vadd.f32 %v6221_v22, %v5933_v2  ;;  %v4770_v47 = vpop.f32.mrb[33].mxu0  ;;  %v5934_v32 = vpop.f32.mrb[34].mxu1 }
 0x2cd   : > { %v6292_v54 = vadd.f32 %v4770_v47, %v2715_v40  ;;  %v6222_v63 = vpop.f32.mrb[34].mxu0  ;;  %v2718_v9 = vpop.f32.mrb[35].mxu1 }
 0x2ce   : > { %4955 = vst [vmem:[%s7907_s17 + $0x110] sm:$0xff] %v6291_v30  ;;  %v6293_v25 = vadd.f32 %v6222_v63, %v5934_v32  ;;  %v4773_v56 = vpop.f32.mrb[35].mxu0 }
 0x2cf   : > { %4953 = vst [vmem:[%s7907_s17 + $0x100] sm:$0xff] %v6292_v54  ;;  %v6294_v26 = vadd.f32 %v4773_v56, %v2718_v9 }
 0x2d0   : > { %4956 = vst [vmem:[%s7907_s17 + $0x118] sm:$0xff] %v6293_v25 }
 0x2d1   : > { %4954 = vst [vmem:[%s7907_s17 + $0x108] sm:$0xff] %v6294_v26 }
 0x2d2   : > { %v5937_v24 = vpop.f32.mrb[36].mxu1 }
 0x2d3   : > { %v6225_v27 = vpop.f32.mrb[36].mxu0  ;;  %v2731_v35 = vpop.f32.mrb[37].mxu1 }
 0x2d4   : > { %v6295_v62 = vadd.f32 %v6225_v27, %v5937_v24  ;;  %v4786_v38 = vpop.f32.mrb[37].mxu0  ;;  %v5938_v6 = vpop.f32.mrb[38].mxu1 }
 0x2d5   : > { %v6296_v14 = vadd.f32 %v4786_v38, %v2731_v35  ;;  %v6226_v46 = vpop.f32.mrb[38].mxu0  ;;  %v2734_v48 = vpop.f32.mrb[39].mxu1 }
 0x2d6   : > { %4959 = vst [vmem:[%s7907_s17 + $0x130] sm:$0xff] %v6295_v62  ;;  %v6297_v3 = vadd.f32 %v6226_v46, %v5938_v6  ;;  %v4789_v37 = vpop.f32.mrb[39].mxu0 }
 0x2d7   : > { %4957 = vst [vmem:[%s7907_s17 + $0x120] sm:$0xff] %v6296_v14  ;;  %v6298_v31 = vadd.f32 %v4789_v37, %v2734_v48 }
 0x2d8   : > { %4960 = vst [vmem:[%s7907_s17 + $0x138] sm:$0xff] %v6297_v3 }
 0x2d9   : > { %4958 = vst [vmem:[%s7907_s17 + $0x128] sm:$0xff] %v6298_v31 }
 0x2da   : > { %v5941_v52 = vpop.f32.mrb[40].mxu1 }
 0x2db   : > { %v6229_v60 = vpop.f32.mrb[40].mxu0  ;;  %v2747_v20 = vpop.f32.mrb[41].mxu1 }
 0x2dc   : > { %v6299_v59 = vadd.f32 %v6229_v60, %v5941_v52  ;;  %v4802_v5 = vpop.f32.mrb[41].mxu0  ;;  %v5942_v57 = vpop.f32.mrb[42].mxu1 }
 0x2dd   : > { %v6300_v28 = vadd.f32 %v4802_v5, %v2747_v20  ;;  %v6230_v61 = vpop.f32.mrb[42].mxu0  ;;  %v2750_v16 = vpop.f32.mrb[43].mxu1 }
 0x2de   : > { %4963 = vst [vmem:[%s7907_s17 + $0x150] sm:$0xff] %v6299_v59  ;;  %v6301_v58 = vadd.f32 %v6230_v61, %v5942_v57  ;;  %v4805_v53 = vpop.f32.mrb[43].mxu0 }
 0x2df   : > { %4961 = vst [vmem:[%s7907_s17 + $0x140] sm:$0xff] %v6300_v28  ;;  %v6302_v12 = vadd.f32 %v4805_v53, %v2750_v16 }
 0x2e0   : > { %4964 = vst [vmem:[%s7907_s17 + $0x158] sm:$0xff] %v6301_v58 }
 0x2e1   : > { %4962 = vst [vmem:[%s7907_s17 + $0x148] sm:$0xff] %v6302_v12 }
 0x2e2   : > { %v5945_v19 = vpop.f32.mrb[44].mxu1 }
 0x2e3   : > { %v6233_v21 = vpop.f32.mrb[44].mxu0  ;;  %v2763_v1 = vpop.f32.mrb[45].mxu1 }
 0x2e4   : > { %v6303_v7 = vadd.f32 %v6233_v21, %v5945_v19  ;;  %v4818_v23 = vpop.f32.mrb[45].mxu0  ;;  %v5946_v15 = vpop.f32.mrb[46].mxu1 }
 0x2e5   : > { %v6304_v36 = vadd.f32 %v4818_v23, %v2763_v1  ;;  %v6234_v42 = vpop.f32.mrb[46].mxu0  ;;  %v2766_v13 = vpop.f32.mrb[47].mxu1 }
 0x2e6   : > { %4967 = vst [vmem:[%s7907_s17 + $0x170] sm:$0xff] %v6303_v7  ;;  %v6305_v0 = vadd.f32 %v6234_v42, %v5946_v15  ;;  %v4821_v43 = vpop.f32.mrb[47].mxu0 }
 0x2e7   : > { %4965 = vst [vmem:[%s7907_s17 + $0x160] sm:$0xff] %v6304_v36  ;;  %v6306_v41 = vadd.f32 %v4821_v43, %v2766_v13 }
 0x2e8   : > { %4968 = vst [vmem:[%s7907_s17 + $0x178] sm:$0xff] %v6305_v0 }
 0x2e9   : > { %4966 = vst [vmem:[%s7907_s17 + $0x168] sm:$0xff] %v6306_v41 }
 0x2ea   : > { %v5949_v44 = vpop.f32.mrb[48].mxu1 }
 0x2eb   : > { %v6237_v51 = vpop.f32.mrb[48].mxu0  ;;  %v2779_v39 = vpop.f32.mrb[49].mxu1 }
 0x2ec   : > { %v6307_v55 = vadd.f32 %v6237_v51, %v5949_v44  ;;  %v4834_v11 = vpop.f32.mrb[49].mxu0  ;;  %v5950_v18 = vpop.f32.mrb[50].mxu1 }
 0x2ed   : > { %v6308_v8 = vadd.f32 %v4834_v11, %v2779_v39  ;;  %v6238_v45 = vpop.f32.mrb[50].mxu0  ;;  %v2782_v29 = vpop.f32.mrb[51].mxu1 }
 0x2ee   : > { %4971 = vst [vmem:[%s7907_s17 + $0x190] sm:$0xff] %v6307_v55  ;;  %v6309_v50 = vadd.f32 %v6238_v45, %v5950_v18  ;;  %v4837_v33 = vpop.f32.mrb[51].mxu0 }
 0x2ef   : > { %4969 = vst [vmem:[%s7907_s17 + $0x180] sm:$0xff] %v6308_v8  ;;  %v6310_v10 = vadd.f32 %v4837_v33, %v2782_v29 }
 0x2f0   : > { %4972 = vst [vmem:[%s7907_s17 + $0x198] sm:$0xff] %v6309_v50 }
 0x2f1   : > { %4970 = vst [vmem:[%s7907_s17 + $0x188] sm:$0xff] %v6310_v10 }
 0x2f2   : > { %v5953_v4 = vpop.f32.mrb[52].mxu1 }
 0x2f3   : > { %v6241_v34 = vpop.f32.mrb[52].mxu0  ;;  %v2795_v17 = vpop.f32.mrb[53].mxu1 }
 0x2f4   : > { %v6311_v49 = vadd.f32 %v6241_v34, %v5953_v4  ;;  %v4850_v2 = vpop.f32.mrb[53].mxu0  ;;  %v5954_v22 = vpop.f32.mrb[54].mxu1 }
 0x2f5   : > { %v6312_v40 = vadd.f32 %v4850_v2, %v2795_v17  ;;  %v6242_v30 = vpop.f32.mrb[54].mxu0  ;;  %v2798_v47 = vpop.f32.mrb[55].mxu1 }
 0x2f6   : > { %4975 = vst [vmem:[%s7907_s17 + $0x1b0] sm:$0xff] %v6311_v49  ;;  %v6313_v32 = vadd.f32 %v6242_v30, %v5954_v22  ;;  %v4853_v54 = vpop.f32.mrb[55].mxu0 }
 0x2f7   : > { %4973 = vst [vmem:[%s7907_s17 + $0x1a0] sm:$0xff] %v6312_v40  ;;  %v6314_v63 = vadd.f32 %v4853_v54, %v2798_v47 }
 0x2f8   : > { %4976 = vst [vmem:[%s7907_s17 + $0x1b8] sm:$0xff] %v6313_v32 }
 0x2f9   : > { %4974 = vst [vmem:[%s7907_s17 + $0x1a8] sm:$0xff] %v6314_v63 }
 0x2fa PF: > { %s12_s11 = sadd.s32 1, %s6864_s11   ;;  %s7993_s9 = smov %s6860_s10 }
 0x2fb   : > { %p9_p5 = scmp.ge.s32.totalorder %s12_s11, 4   ;;  %s7994_s10 = smov %s7996_s12 }
 0x2fd   :  { %11 = sbr.rel (!%p9_p5) target bundleno = 2 (0x2), region = 67 }

</bundles_post_ra>
